<compile_context>
chip_gen: v6e
topology: v6e:2x2x1
jax: 0.10.0
libtpu: 0.0.40
codegen_flags: <defaults>
</compile_context>

<pallas_src>
import functools

import jax
import jax.numpy as jnp
from jax.experimental import pallas as pl
from jax.experimental.pallas import tpu as pltpu

LANE = 128


def _round_up(v, m):
    return ((v + m - 1) // m) * m


# ---------------------------------------------------------------------------
# in-kernel helpers
# ---------------------------------------------------------------------------
def _mean_channels(slab_ref, *, c, fold, inv_count):
    """Per-sample per-channel spatial mean of a lane-packed activation slab.

    slab_ref: (N, R, W).  If `fold`, W == L*c with L spatial positions packed
    per 128-lane row; otherwise W == channels zero-padded to a lane multiple.
    Returns (N, W) f32 whose first c lanes (and, when folded, every c-lane
    group) hold the channel means.
    """
    s = jnp.sum(slab_ref[...].astype(jnp.float32), axis=1)          # (N, W)
    if fold:
        span = s.shape[-1] // 2
        while span >= c:
            s = s + pltpu.roll(s, span, axis=1)                     # XLU lane fold
            span //= 2
    return s * inv_count


def _squeeze_excite(pooled, a_down, wd_ref, bd_ref, wu_ref, bu_ref):
    """Batched SE head: (N, CP) pooled means -> (N, GP) fused sigmoid gates."""
    d = jnp.dot(pooled, wd_ref[...], preferred_element_type=jnp.float32) + bd_ref[...]
    d = jnp.where(d >= 0.0, d, d * a_down)                          # PReLU (channel_down)
    o = jnp.dot(d, wu_ref[...], preferred_element_type=jnp.float32) + bu_ref[...]
    return 1.0 / (1.0 + jnp.exp(-o))                                # both sigmoid gates


# ---------------------------------------------------------------------------
# kernels (single invocation, whole batch resident in VMEM)
# ---------------------------------------------------------------------------
def _channel_att_up_kernel(x_ref, y_ref, alphas_ref, w4_ref, b4_ref,
                           wd_ref, bd_ref, wu_ref, bu_ref, o_ref,
                           *, c, y_fold, inv_y):
    n, hx, wx, _ = x_ref.shape
    cp4 = w4_ref.shape[-1]
    cp = cp4 // 4
    rows = n * hx * wx

    # --- ConvTranspose2d(C, C, 3, stride=2, pad=1, out_pad=1) + PReLU -------
    x4 = x_ref[...]                                                 # (N, hx, wx, C) f32
    zr = jnp.zeros((n, 1, wx, c), jnp.float32)
    zc = jnp.zeros((n, hx, 1, c), jnp.float32)
    x_sh = jnp.concatenate([x4[:, 1:, :, :], zr], axis=1)           # x[r+1, s]
    x_sw = jnp.concatenate([x4[:, :, 1:, :], zc], axis=2)           # x[r, s+1]
    x_hw = jnp.concatenate([x_sh[:, :, 1:, :], zc], axis=2)         # x[r+1, s+1]

    def mm(a, j):
        return jnp.dot(a.reshape(rows, c), w4_ref[j],
                       preferred_element_type=jnp.float32)

    # The 4 lane-aligned CP-wide column blocks of the result are the
    # (even/odd row, even/odd col) output-pixel parity classes of the
    # stride-2 transposed conv; together they cover the full (2hx, 2wx) map.
    e = mm(x4, 0) + mm(x_sw, 1) + mm(x_sh, 2) + mm(x_hw, 3)          # (rows, 4*CP)

    v = e + b4_ref[...]                                              # one hoisted bias bcast
    a_up = alphas_ref[0]
    v = jnp.where(v >= 0.0, v, v * a_up)                             # PReLU (self.up)
    vs = jnp.sum(v.reshape(n, hx * wx, cp4), axis=1)                 # per-sample sums (N, 4CP)
    s_up = (vs[:, 0:cp] + vs[:, cp:2 * cp]
            + vs[:, 2 * cp:3 * cp] + vs[:, 3 * cp:4 * cp])           # aligned class fold
    mean_up = s_up * (1.0 / (4.0 * hx * wx))                         # mean of upsampled x

    # avg_pool(x_up + y) == mean(x_up) + mean(y): fusion never materialized.
    mean_y = _mean_channels(y_ref, c=c, fold=y_fold, inv_count=inv_y)

    o_ref[...] = _squeeze_excite(mean_up + mean_y, alphas_ref[1],
                                 wd_ref, bd_ref, wu_ref, bu_ref).astype(o_ref.dtype)


def _channel_att_eq_kernel(x_ref, y_ref, alphas_ref,
                           wd_ref, bd_ref, wu_ref, bu_ref, o_ref,
                           *, c, fold, inv_count):
    mean_x = _mean_channels(x_ref, c=c, fold=fold, inv_count=inv_count)
    mean_y = _mean_channels(y_ref, c=c, fold=fold, inv_count=inv_count)
    o_ref[...] = _squeeze_excite(mean_x + mean_y, alphas_ref[1],
                                 wd_ref, bd_ref, wu_ref, bu_ref).astype(o_ref.dtype)


# ---------------------------------------------------------------------------
# wrapper
# ---------------------------------------------------------------------------
def _pack_reduce_slab(t_nchw, cp):
    """NCHW f32 -> (slab, fold): lane-packed bf16 slab for the channel-mean path."""
    n, c, h, w = t_nchw.shape
    nhwc = jnp.transpose(t_nchw, (0, 2, 3, 1))
    if c < LANE and LANE % c == 0 and (h * w) % (LANE // c) == 0:
        ell = LANE // c                                  # spatial positions per 128-lane row
        slab = nhwc.reshape(n, (h * w) // ell, LANE)
        fold = True
    else:
        slab = nhwc.reshape(n, h * w, c)
        if cp > c:
            slab = jnp.pad(slab, ((0, 0), (0, 0), (0, cp - c)))
        fold = False
    return slab.astype(jnp.bfloat16), fold


@jax.jit
def channel_att_forward(x, y, params):
    """x, y: NCHW float32.  Returns [out_x, out_y], each (N, C, 1, 1)."""
    w4, b4 = params["w4"], params["b4"]
    w_d, b_d = params["w_d"], params["b_d"]
    w_u, b_u = params["w_u"], params["b_u"]
    alphas = params["alphas"]

    n, c, hx, wx = x.shape
    ny, cy, hy, wy = y.shape
    assert n == ny and c == cy
    cp = w_d.shape[0]                                    # lane-padded channel count
    gp = w_u.shape[1]                                    # lane-padded fused-gate width

    vmem = pl.BlockSpec(memory_space=pltpu.MemorySpace.VMEM)
    smem = pl.BlockSpec(memory_space=pltpu.MemorySpace.SMEM)

    y_slab, y_fold = _pack_reduce_slab(y, cp)

    if hx < hy:                                          # static (trace-time) branch
        # TODO(synk): 'up' branch implemented for stride=2 only (kernel 3x3,
        # padding 1, output_padding 1 -> exact 2x upsample).
        assert hy == 2 * hx and wy == 2 * wx
        x_nhwc = jnp.transpose(x, (0, 2, 3, 1))          # (N, hx, wx, C) f32
        kernel = functools.partial(_channel_att_up_kernel, c=c,
                                   y_fold=y_fold, inv_y=1.0 / (hy * wy))
        operands = (x_nhwc, y_slab, alphas, w4, b4, w_d, b_d, w_u, b_u)
        in_specs = [vmem, vmem, smem, vmem, vmem, vmem, vmem, vmem, vmem]
    else:
        assert (hx, wx) == (hy, wy)
        x_slab, x_fold = _pack_reduce_slab(x, cp)
        kernel = functools.partial(_channel_att_eq_kernel, c=c,
                                   fold=x_fold, inv_count=1.0 / (hx * wx))
        operands = (x_slab, y_slab, alphas, w_d, b_d, w_u, b_u)
        in_specs = [vmem, vmem, smem, vmem, vmem, vmem, vmem]

    # Whole batch in ONE grid-less pallas_call: a per-sample grid would only
    # add per-step overhead on single-TC v5e/v6e and force M=1 SE matmuls.
    out = pl.pallas_call(
        kernel,
        out_shape=jax.ShapeDtypeStruct((n, gp), jnp.float32),
        in_specs=in_specs,
        out_specs=vmem,
    )(*operands)

    out_x = out[:, :c].reshape(n, c, 1, 1)
    out_y = out[:, c:2 * c].reshape(n, c, 1, 1)
    return [out_x, out_y]


# ---------------------------------------------------------------------------
# parameters (PyTorch layout) and packing into fused, lane-padded matmul form
# ---------------------------------------------------------------------------
def init_channel_att_params(key, channel, reduction=8):
    C, Cr = channel, channel // reduction
    ks = jax.random.split(key, 8)
    nrm = lambda k, s: 0.1 * jax.random.normal(k, s, jnp.float32)
    return {
        "w_up":   nrm(ks[0], (C, C, 3, 3)),      # ConvTranspose2d.weight (Cin,Cout,kH,kW)
        "b_up":   nrm(ks[1], (C,)),
        "a_up":   jnp.array(0.25, jnp.float32),  # nn.PReLU() single parameter
        "w_down": nrm(ks[2], (Cr, C, 1, 1)),     # Conv2d.weight (Cout,Cin,1,1)
        "b_down": nrm(ks[3], (Cr,)),
        "a_down": jnp.array(0.25, jnp.float32),
        "w_up1":  nrm(ks[4], (C, Cr, 1, 1)),
        "b_up1":  nrm(ks[5], (C,)),
        "w_up2":  nrm(ks[6], (C, Cr, 1, 1)),
        "b_up2":  nrm(ks[7], (C,)),
    }


def pack_params(pt):
    """PyTorch-layout params -> lane-padded fused matmul params for the kernel."""
    C = pt["w_up"].shape[0]
    Cr = pt["w_down"].shape[0]
    CP = _round_up(C, LANE)
    CrP = _round_up(Cr, LANE)
    GP = _round_up(2 * C, LANE)

    def pad_cols(m, width):
        return jnp.pad(m, ((0, 0), (0, width - m.shape[1])))

    def tap(kh, kw):                                     # (C, CP) zero lane padding
        return pad_cols(pt["w_up"][:, :, kh, kw], CP)

    Z = jnp.zeros((C, CP), jnp.float32)
    # Column block q is output parity class q=0:(ee) 1:(eo) 2:(oe) 3:(oo);
    # matrix j multiplies shifted copy j of x: {x, x[r,s+1], x[r+1,s], x[r+1,s+1]}.
    w4 = jnp.stack([
        jnp.concatenate([tap(1, 1), tap(1, 2), tap(2, 1), tap(2, 2)], axis=1),
        jnp.concatenate([Z,         tap(1, 0), Z,         tap(2, 0)], axis=1),
        jnp.concatenate([Z,         Z,         tap(0, 1), tap(0, 2)], axis=1),
        jnp.concatenate([Z,         Z,         Z,         tap(0, 0)], axis=1),
    ])                                                                      # (4, C, 4*CP)
    b4 = jnp.tile(pad_cols(pt["b_up"].reshape(1, C), CP), (1, 4))           # (1, 4*CP)

    w_d = jnp.zeros((CP, CrP), jnp.float32).at[:C, :Cr].set(pt["w_down"][:, :, 0, 0].T)
    b_d = jnp.zeros((1, CrP), jnp.float32).at[0, :Cr].set(pt["b_down"])
    # channel_up1 / channel_up2 share their input -> one (CrP, GP) matmul.
    w_u = (jnp.zeros((CrP, GP), jnp.float32)
           .at[:Cr, :C].set(pt["w_up1"][:, :, 0, 0].T)
           .at[:Cr, C:2 * C].set(pt["w_up2"][:, :, 0, 0].T))
    b_u = (jnp.zeros((1, GP), jnp.float32)
           .at[0, :2 * C].set(jnp.concatenate([pt["b_up1"], pt["b_up2"]])))
    alphas = jnp.stack([pt["a_up"].reshape(()), pt["a_down"].reshape(())])   # (2,) -> SMEM

    return {"w4": w4, "b4": b4, "w_d": w_d, "b_d": b_d,
            "w_u": w_u, "b_u": b_u, "alphas": alphas}


# ---------------------------------------------------------------------------
# pure-JAX reference (for in-script correctness check)
# ---------------------------------------------------------------------------
@jax.jit
def reference_forward(x, y, pt):
    def prelu(v, a):
        return jnp.where(v >= 0, v, a * v)

    if x.shape[2] < y.shape[2]:
        # ConvTranspose2d(stride=2, pad=1, output_padding=1) as a dilated conv.
        w = jnp.transpose(pt["w_up"][:, :, ::-1, ::-1], (1, 0, 2, 3))  # OIHW, flipped
        x = jax.lax.conv_general_dilated(
            x, w, window_strides=(1, 1), padding=((1, 2), (1, 2)),
            lhs_dilation=(2, 2), dimension_numbers=("NCHW", "OIHW", "NCHW"))
        x = prelu(x + pt["b_up"].reshape(1, -1, 1, 1), pt["a_up"])
    fusion = x + y
    p = jnp.mean(fusion, axis=(2, 3))                                  # (N, C)
    d = prelu(p @ pt["w_down"][:, :, 0, 0].T + pt["b_down"], pt["a_down"])
    ox = jax.nn.sigmoid(d @ pt["w_up1"][:, :, 0, 0].T + pt["b_up1"])
    oy = jax.nn.sigmoid(d @ pt["w_up2"][:, :, 0, 0].T + pt["b_up2"])
    n, c = ox.shape
    return ox.reshape(n, c, 1, 1), oy.reshape(n, c, 1, 1)


# ---------------------------------------------------------------------------
# demo
# ---------------------------------------------------------------------------
if __name__ == "__main__":
    N, C, reduction = 2, 32, 8          # args.feature_num = 32, reduction = 8
    Hx = Wx = 8                         # low-res x; y is 16x16 -> 'up' branch runs

    key = jax.random.PRNGKey(0)
    kx, ky, kp = jax.random.split(key, 3)
    x = jax.random.normal(kx, (N, C, Hx, Wx), jnp.float32)
    y = jax.random.normal(ky, (N, C, 2 * Hx, 2 * Wx), jnp.float32)

    pt_params = init_channel_att_params(kp, C, reduction)
    params = pack_params(pt_params)

    # Path 1: x lower resolution than y -> ConvTranspose2d 'up' branch.
    out_x, out_y = channel_att_forward(x, y, params)
    out_x, out_y = jax.block_until_ready((out_x, out_y))
    ref_x, ref_y = reference_forward(x, y, pt_params)
    assert out_x.shape == (N, C, 1, 1) and out_y.shape == (N, C, 1, 1)
    assert bool(jnp.all(jnp.isfinite(out_x))) and bool(jnp.all(jnp.isfinite(out_y)))
    assert float(jnp.max(jnp.abs(out_x - ref_x))) < 2e-2
    assert float(jnp.max(jnp.abs(out_y - ref_y))) < 2e-2

    # Path 2: equal resolutions -> no upsampling branch.
    out_x2, out_y2 = channel_att_forward(y, y, params)
    out_x2, out_y2 = jax.block_until_ready((out_x2, out_y2))
    ref_x2, ref_y2 = reference_forward(y, y, pt_params)
    assert out_x2.shape == (N, C, 1, 1) and out_y2.shape == (N, C, 1, 1)
    assert float(jnp.max(jnp.abs(out_x2 - ref_x2))) < 2e-2
    assert float(jnp.max(jnp.abs(out_y2 - ref_y2))) < 2e-2

    print("KERNEL_OK")
</pallas_src>

<mosaic_0001>
module attributes {stable_mosaic.version = 11 : i64} {
  func.func @_channel_att_up_kernel(%arg0: memref<2x8x8x32xf32, #tpu.memory_space<vmem>>, %arg1: memref<2x64x128xbf16, #tpu.memory_space<vmem>>, %arg2: memref<2xf32, #tpu.memory_space<smem>>, %arg3: memref<4x32x512xf32, #tpu.memory_space<vmem>>, %arg4: memref<1x512xf32, #tpu.memory_space<vmem>>, %arg5: memref<128x128xf32, #tpu.memory_space<vmem>>, %arg6: memref<1x128xf32, #tpu.memory_space<vmem>>, %arg7: memref<128x128xf32, #tpu.memory_space<vmem>>, %arg8: memref<1x128xf32, #tpu.memory_space<vmem>>, %arg9: memref<2x128xf32, #tpu.memory_space<vmem>>) attributes {dimension_semantics = [], scalar_prefetch = 0 : i64, scratch_operands = 0 : i64, tpu.core_type = #tpu.core_type<tc>} {
    %c0 = arith.constant 0 : index
    %c0_0 = arith.constant 0 : index
    %c0_1 = arith.constant 0 : index
    %c0_2 = arith.constant 0 : index
    %0 = vector.load %arg0[%c0, %c0_0, %c0_1, %c0_2] : memref<2x8x8x32xf32, #tpu.memory_space<vmem>>, vector<2x8x8x32xf32>
    %cst = arith.constant 0.000000e+00 : f32
    %1 = vector.broadcast %cst : f32 to vector<2x1x8x32xf32>
    %cst_3 = arith.constant 0.000000e+00 : f32
    %2 = vector.broadcast %cst_3 : f32 to vector<2x8x1x32xf32>
    %3 = vector.extract_strided_slice %0 {offsets = [0, 1, 0, 0], sizes = [2, 7, 8, 32], strides = [1, 1, 1, 1]} : vector<2x8x8x32xf32> to vector<2x7x8x32xf32>
    %4 = tpu.concatenate %3, %1 in 1 : vector<2x7x8x32xf32>, vector<2x1x8x32xf32> -> vector<2x8x8x32xf32>
    %5 = vector.extract_strided_slice %0 {offsets = [0, 0, 1, 0], sizes = [2, 8, 7, 32], strides = [1, 1, 1, 1]} : vector<2x8x8x32xf32> to vector<2x8x7x32xf32>
    %6 = tpu.concatenate %5, %2 in 2 : vector<2x8x7x32xf32>, vector<2x8x1x32xf32> -> vector<2x8x8x32xf32>
    %7 = vector.extract_strided_slice %4 {offsets = [0, 0, 1, 0], sizes = [2, 8, 7, 32], strides = [1, 1, 1, 1]} : vector<2x8x8x32xf32> to vector<2x8x7x32xf32>
    %8 = tpu.concatenate %7, %2 in 2 : vector<2x8x7x32xf32>, vector<2x8x1x32xf32> -> vector<2x8x8x32xf32>
    %9 = vector.shape_cast %0 : vector<2x8x8x32xf32> to vector<128x32xf32>
    %c0_4 = arith.constant 0 : index
    %c0_5 = arith.constant 0 : index
    %c0_6 = arith.constant 0 : index
    %10 = vector.load %arg3[%c0_4, %c0_5, %c0_6] : memref<4x32x512xf32, #tpu.memory_space<vmem>>, vector<1x32x512xf32>
    %11 = vector.shape_cast %10 : vector<1x32x512xf32> to vector<32x512xf32>
    %cst_7 = arith.constant dense<0.000000e+00> : vector<128x512xf32>
    %12 = tpu.matmul %9, %11, %cst_7 {dimension_numbers = #tpu.dot_dimension_numbers<[1], [0], [0], [1], [0, 0, 1, 1], [], []>} : vector<128x32xf32>, vector<32x512xf32>, vector<128x512xf32> -> vector<128x512xf32>
    %13 = vector.shape_cast %6 : vector<2x8x8x32xf32> to vector<128x32xf32>
    %c1 = arith.constant 1 : index
    %c0_8 = arith.constant 0 : index
    %c0_9 = arith.constant 0 : index
    %14 = vector.load %arg3[%c1, %c0_8, %c0_9] : memref<4x32x512xf32, #tpu.memory_space<vmem>>, vector<1x32x512xf32>
    %15 = vector.shape_cast %14 : vector<1x32x512xf32> to vector<32x512xf32>
    %cst_10 = arith.constant dense<0.000000e+00> : vector<128x512xf32>
    %16 = tpu.matmul %13, %15, %cst_10 {dimension_numbers = #tpu.dot_dimension_numbers<[1], [0], [0], [1], [0, 0, 1, 1], [], []>} : vector<128x32xf32>, vector<32x512xf32>, vector<128x512xf32> -> vector<128x512xf32>
    %17 = arith.addf %12, %16 : vector<128x512xf32>
    %18 = vector.shape_cast %4 : vector<2x8x8x32xf32> to vector<128x32xf32>
    %c2 = arith.constant 2 : index
    %c0_11 = arith.constant 0 : index
    %c0_12 = arith.constant 0 : index
    %19 = vector.load %arg3[%c2, %c0_11, %c0_12] : memref<4x32x512xf32, #tpu.memory_space<vmem>>, vector<1x32x512xf32>
    %20 = vector.shape_cast %19 : vector<1x32x512xf32> to vector<32x512xf32>
    %cst_13 = arith.constant dense<0.000000e+00> : vector<128x512xf32>
    %21 = tpu.matmul %18, %20, %cst_13 {dimension_numbers = #tpu.dot_dimension_numbers<[1], [0], [0], [1], [0, 0, 1, 1], [], []>} : vector<128x32xf32>, vector<32x512xf32>, vector<128x512xf32> -> vector<128x512xf32>
    %22 = arith.addf %17, %21 : vector<128x512xf32>
    %23 = vector.shape_cast %8 : vector<2x8x8x32xf32> to vector<128x32xf32>
    %c3 = arith.constant 3 : index
    %c0_14 = arith.constant 0 : index
    %c0_15 = arith.constant 0 : index
    %24 = vector.load %arg3[%c3, %c0_14, %c0_15] : memref<4x32x512xf32, #tpu.memory_space<vmem>>, vector<1x32x512xf32>
    %25 = vector.shape_cast %24 : vector<1x32x512xf32> to vector<32x512xf32>
    %cst_16 = arith.constant dense<0.000000e+00> : vector<128x512xf32>
    %26 = tpu.matmul %23, %25, %cst_16 {dimension_numbers = #tpu.dot_dimension_numbers<[1], [0], [0], [1], [0, 0, 1, 1], [], []>} : vector<128x32xf32>, vector<32x512xf32>, vector<128x512xf32> -> vector<128x512xf32>
    %27 = arith.addf %22, %26 : vector<128x512xf32>
    %c0_17 = arith.constant 0 : index
    %c0_18 = arith.constant 0 : index
    %28 = vector.load %arg4[%c0_17, %c0_18] : memref<1x512xf32, #tpu.memory_space<vmem>>, vector<1x512xf32>
    %29 = vector.broadcast %28 : vector<1x512xf32> to vector<128x512xf32>
    %30 = arith.addf %27, %29 : vector<128x512xf32>
    %c0_19 = arith.constant 0 : index
    %31 = memref.load %arg2[%c0_19] : memref<2xf32, #tpu.memory_space<smem>>
    %cst_20 = arith.constant 0.000000e+00 : f32
    %32 = vector.broadcast %cst_20 : f32 to vector<128x512xf32>
    %33 = arith.cmpf oge, %30, %32 : vector<128x512xf32>
    %34 = vector.broadcast %31 : f32 to vector<128x512xf32>
    %35 = arith.mulf %30, %34 : vector<128x512xf32>
    %36 = arith.select %33, %30, %35 : vector<128x512xi1>, vector<128x512xf32>
    %37 = vector.shape_cast %36 : vector<128x512xf32> to vector<2x64x512xf32>
    %cst_21 = arith.constant dense<0.000000e+00> : vector<2x512xf32>
    %38 = vector.multi_reduction <add>, %37, %cst_21 [1] : vector<2x64x512xf32> to vector<2x512xf32>
    %39 = vector.extract_strided_slice %38 {offsets = [0, 0], sizes = [2, 128], strides = [1, 1]} : vector<2x512xf32> to vector<2x128xf32>
    %40 = vector.extract_strided_slice %38 {offsets = [0, 128], sizes = [2, 128], strides = [1, 1]} : vector<2x512xf32> to vector<2x128xf32>
    %41 = arith.addf %39, %40 : vector<2x128xf32>
    %42 = vector.extract_strided_slice %38 {offsets = [0, 256], sizes = [2, 128], strides = [1, 1]} : vector<2x512xf32> to vector<2x128xf32>
    %43 = arith.addf %41, %42 : vector<2x128xf32>
    %44 = vector.extract_strided_slice %38 {offsets = [0, 384], sizes = [2, 128], strides = [1, 1]} : vector<2x512xf32> to vector<2x128xf32>
    %45 = arith.addf %43, %44 : vector<2x128xf32>
    %cst_22 = arith.constant 3.906250e-03 : f32
    %46 = vector.broadcast %cst_22 : f32 to vector<2x128xf32>
    %47 = arith.mulf %45, %46 : vector<2x128xf32>
    %c0_23 = arith.constant 0 : index
    %c0_24 = arith.constant 0 : index
    %c0_25 = arith.constant 0 : index
    %48 = vector.load %arg1[%c0_23, %c0_24, %c0_25] : memref<2x64x128xbf16, #tpu.memory_space<vmem>>, vector<2x64x128xbf16>
    %49 = arith.extf %48 : vector<2x64x128xbf16> to vector<2x64x128xf32>
    %cst_26 = arith.constant dense<0.000000e+00> : vector<2x128xf32>
    %50 = vector.multi_reduction <add>, %49, %cst_26 [1] : vector<2x64x128xf32> to vector<2x128xf32>
    %c64_i32 = arith.constant 64 : i32
    %51 = tpu.dynamic_rotate %50 by %c64_i32 dim 1 : vector<2x128xf32>, i32 -> vector<2x128xf32>
    %52 = arith.addf %50, %51 : vector<2x128xf32>
    %c32_i32 = arith.constant 32 : i32
    %53 = tpu.dynamic_rotate %52 by %c32_i32 dim 1 : vector<2x128xf32>, i32 -> vector<2x128xf32>
    %54 = arith.addf %52, %53 : vector<2x128xf32>
    %cst_27 = arith.constant 3.906250e-03 : f32
    %55 = vector.broadcast %cst_27 : f32 to vector<2x128xf32>
    %56 = arith.mulf %54, %55 : vector<2x128xf32>
    %57 = arith.addf %47, %56 : vector<2x128xf32>
    %c1_28 = arith.constant 1 : index
    %58 = memref.load %arg2[%c1_28] : memref<2xf32, #tpu.memory_space<smem>>
    %c0_29 = arith.constant 0 : index
    %c0_30 = arith.constant 0 : index
    %59 = vector.load %arg5[%c0_29, %c0_30] : memref<128x128xf32, #tpu.memory_space<vmem>>, vector<128x128xf32>
    %cst_31 = arith.constant dense<0.000000e+00> : vector<2x128xf32>
    %60 = tpu.matmul %57, %59, %cst_31 {dimension_numbers = #tpu.dot_dimension_numbers<[1], [0], [0], [1], [0, 0, 1, 1], [], []>} : vector<2x128xf32>, vector<128x128xf32>, vector<2x128xf32> -> vector<2x128xf32>
    %c0_32 = arith.constant 0 : index
    %c0_33 = arith.constant 0 : index
    %61 = vector.load %arg6[%c0_32, %c0_33] : memref<1x128xf32, #tpu.memory_space<vmem>>, vector<1x128xf32>
    %62 = vector.broadcast %61 : vector<1x128xf32> to vector<2x128xf32>
    %63 = arith.addf %60, %62 : vector<2x128xf32>
    %cst_34 = arith.constant 0.000000e+00 : f32
    %64 = vector.broadcast %cst_34 : f32 to vector<2x128xf32>
    %65 = arith.cmpf oge, %63, %64 : vector<2x128xf32>
    %66 = vector.broadcast %58 : f32 to vector<2x128xf32>
    %67 = arith.mulf %63, %66 : vector<2x128xf32>
    %68 = arith.select %65, %63, %67 : vector<2x128xi1>, vector<2x128xf32>
    %c0_35 = arith.constant 0 : index
    %c0_36 = arith.constant 0 : index
    %69 = vector.load %arg7[%c0_35, %c0_36] : memref<128x128xf32, #tpu.memory_space<vmem>>, vector<128x128xf32>
    %cst_37 = arith.constant dense<0.000000e+00> : vector<2x128xf32>
    %70 = tpu.matmul %68, %69, %cst_37 {dimension_numbers = #tpu.dot_dimension_numbers<[1], [0], [0], [1], [0, 0, 1, 1], [], []>} : vector<2x128xf32>, vector<128x128xf32>, vector<2x128xf32> -> vector<2x128xf32>
    %c0_38 = arith.constant 0 : index
    %c0_39 = arith.constant 0 : index
    %71 = vector.load %arg8[%c0_38, %c0_39] : memref<1x128xf32, #tpu.memory_space<vmem>>, vector<1x128xf32>
    %72 = vector.broadcast %71 : vector<1x128xf32> to vector<2x128xf32>
    %73 = arith.addf %70, %72 : vector<2x128xf32>
    %cst_40 = arith.constant 0.000000e+00 : f32
    %74 = vector.broadcast %cst_40 : f32 to vector<2x128xf32>
    %75 = arith.subf %74, %73 : vector<2x128xf32>
    %76 = math.exp %75 : vector<2x128xf32>
    %cst_41 = arith.constant 1.000000e+00 : f32
    %77 = vector.broadcast %cst_41 : f32 to vector<2x128xf32>
    %78 = arith.addf %77, %76 : vector<2x128xf32>
    %cst_42 = arith.constant 1.000000e+00 : f32
    %79 = vector.broadcast %cst_42 : f32 to vector<2x128xf32>
    %80 = arith.divf %79, %78 : vector<2x128xf32>
    %c0_43 = arith.constant 0 : index
    %c0_44 = arith.constant 0 : index
    %81 = vector.load %arg9[%c0_43, %c0_44] : memref<2x128xf32, #tpu.memory_space<vmem>>, vector<2x128xf32>
    tpu.vector_store %arg9[%c0_43, %c0_44], %80 {strides = array<i32>} : memref<2x128xf32, #tpu.memory_space<vmem>>, vector<2x128xf32>,
    return
  }
}

</mosaic_0001>

<bundles_post_ra>
// kernel: channel_att_forward.1
= control target key start
LH: loop header
LB: loop body
LE: loop exit
PB: predicated region body
PF: predicated region fallthrough
CT: control target
= control target key end

     0   :  { %14 = vsyncpa [#allocation3], 0  ;;  %s4477_s0 = inlined_call_operand.vmem [shape: f32[2,8,8,32], index: 0, kind: input, shape index: {}]   ;;  %s4478_s1 = inlined_call_operand.vmem [shape: bf16[2,64,128], index: 1, kind: input, shape index: {}]   ;;  %s4479_s2 = inlined_call_operand.vmem [shape: f32[2], index: 2, kind: input, shape index: {}]   ;;  %s4480_s3 = inlined_call_operand.vmem [shape: f32[4,32,512], index: 3, kind: input, shape index: {}]   ;;  %s4481_s4 = inlined_call_operand.vmem [shape: f32[1,512], index: 4, kind: input, shape index: {}]   ;;  %s4482_s5 = inlined_call_operand.vmem [shape: f32[128,128], index: 5, kind: input, shape index: {}]   ;;  %s4483_s6 = inlined_call_operand.vmem [shape: f32[1,128], index: 6, kind: input, shape index: {}]   ;;  %s4484_s7 = inlined_call_operand.vmem [shape: f32[128,128], index: 7, kind: input, shape index: {}]   ;;  %s4485_s8 = inlined_call_operand.vmem [shape: f32[1,128], index: 8, kind: input, shape index: {}]   ;;  %s4486_s9 = inlined_call_operand.vmem [shape: f32[2,128], index: 9, kind: output, shape index: {}]  }
   0x1   :  { %s25_s11 = sshll.u32 %s4479_s2, 4  ;;  %s26_s11 = int_to_ptr.vmem [resolvable:$true] %s25_s11 }
   0x2   :  { %s2714_s12 = scalar_lea.vmem %s26_s11, 16  ;;  %p2719_p1 = scmp.lt.s32.totalorder %s26_s11, %s26_s11 }
   0x3   :  { %p2715_p0 = scmp.ne.s32.totalorder %s26_s11, %s2714_s12  ;;  %p2720_p2 = scmp.lt.s32.totalorder %s2714_s12, %s2714_s12 }
   0x5   :  { %p2721_p3 = por %p2720_p2, %p2719_p1 }
   0x7   :  { %p2722_p4 = pnand %p2721_p3, %p2715_p0 }
   0x9   :  { %2725 = shalt.err (!%p2722_p4)
}
   0xa   :  { %s2728_s13 = smov [#allocation2]  }
   0xb   :  { %28 = dma.vmem_to_smem %s26_s11, 16, %s2728_s13, [#allocation3]  }
   0xc   :  { %2726 = dma.done.wait [#allocation3], 16  }
   0xd   :  { %2727 = vsyncadd [#allocation3], 4294967280 }
   0xe   :  { %44 = sfence }
   0xf   :  { %v2400_v0 = vld [vmem:[%s4480_s3 + $0xe8] sm:$0xff]  ;;  %v2402_v1 = vld [vmem:[%s4480_s3 + $0xf8] sm:$0xff]  ;;  %v2399_v2 = vld [vmem:[%s4480_s3 + $0xe0] sm:$0xff]  ;;  %vm109_vm0 = vcmask 1046528   ;;  %vm163_vm1 = vcmask 261120   ;;  %v4489_v20 = vmov 0.0  }
  0x10   :  { %236 = vmatprep.subr.mxu0 %v2400_v0  ;;  %397 = vmatprep.subr.mxu1 %v2402_v1  ;;  %v2401_v3 = vld [vmem:[%s4480_s3 + $0xf0] sm:$0xff]  ;;  %v2396_v4 = vld [vmem:[%s4480_s3 + $0xc8] sm:$0xff]  ;;  %v2398_v5 = vld [vmem:[%s4480_s3 + $0xd8] sm:$0xff]  ;;  %vm2151_vm2 = vcmask 1041409   ;;  %s2730_s15 = smov 64   ;;  %vm2732_vm3 = vmmov 0  }
  0x11   :  { %237 = vmatpush1.msra.mxu0 %v2399_v2  ;;  %398 = vmatpush1.msra.mxu1 %v2401_v3  ;;  %v2395_v6 = vld [vmem:[%s4480_s3 + $0xc0] sm:$0xff]  ;;  %v2397_v7 = vld [vmem:[%s4480_s3 + $0xd0] sm:$0xff]  ;;  %v2392_v8 = vld [vmem:[%s4480_s3 + $0xa8] sm:$0xff]  ;;  %s4077_s27 = sld [smem:[#allocation2]] }
  0x12   :  { %238 = vmatprep.subr.mxu0 %v2396_v4  ;;  %399 = vmatprep.subr.mxu1 %v2398_v5  ;;  %v2394_v9 = vld [vmem:[%s4480_s3 + $0xb8] sm:$0xff]  ;;  %v2391_v10 = vld [vmem:[%s4480_s3 + $0xa0] sm:$0xff]  ;;  %v2393_v11 = vld [vmem:[%s4480_s3 + $0xb0] sm:$0xff]  ;;  %s2559_s19 = sld [smem:[#allocation2 + $0x1]] }
  0x13   :  { %239 = vmatpush1.msra.mxu0 %v2395_v6  ;;  %400 = vmatpush1.msra.mxu1 %v2397_v7  ;;  %v2388_v12 = vld [vmem:[%s4480_s3 + $0x88] sm:$0xff]  ;;  %v2390_v13 = vld [vmem:[%s4480_s3 + $0x98] sm:$0xff]  ;;  %v2387_v14 = vld [vmem:[%s4480_s3 + $0x80] sm:$0xff] }
  0x14   :  { %240 = vmatprep.subr.mxu0 %v2392_v8  ;;  %401 = vmatprep.subr.mxu1 %v2394_v9  ;;  %v2834_v15 = vld [vmem:[%s4477_s0] sm:$0xff]  ;;  %v2389_v16 = vld [vmem:[%s4480_s3 + $0x90] sm:$0xff]  ;;  %v2843_v18 = vld [vmem:[%s4477_s0 + $0x8] sm:$0xff] }
  0x15   :  { %241 = vmatpush1.msra.mxu0 %v2391_v10  ;;  %402 = vmatpush1.msra.mxu1 %v2393_v11  ;;  %v77_v17 = vrot.slane %v2834_v15, 1  ;;  %v78_v19 = vrot.slane %v2843_v18, 1  ;;  %v143_v22 = vld [vmem:[%s4480_s3 + $0x68] sm:$0xff]  ;;  %v2854_v23 = vld [vmem:[%s4477_s0 + $0x10] sm:$0xff]  ;;  %v142_v24 = vld [vmem:[%s4480_s3 + $0x60] sm:$0xff] }
  0x16   :  { %242 = vmatprep.subr.mxu0 %v2388_v12  ;;  %403 = vmatprep.subr.mxu1 %v2390_v13  ;;  %v145_v25 = vld [vmem:[%s4480_s3 + $0x78] sm:$0xff]  ;;  %v139_v26 = vld [vmem:[%s4480_s3 + $0x48] sm:$0xff]  ;;  %v79_v28 = vrot.slane %v2854_v23, 1  ;;  %v144_v29 = vld [vmem:[%s4480_s3 + $0x70] sm:$0xff] }
  0x17   :  { %243 = vmatpush1.msra.mxu0 %v2387_v14  ;;  %276 = vmatprep.mubr.f32.mxu0 %v4489_v20  ;;  %v110_v21 = vsel %vm109_vm0, %v77_v17, 0.0  ;;  %v2870_v27 = vsel %vm109_vm0, %v78_v19, 0.0  ;;  %v2880_v30 = vld [vmem:[%s4477_s0 + $0x18] sm:$0xff]  ;;  %v138_v31 = vld [vmem:[%s4480_s3 + $0x40] sm:$0xff]  ;;  %v135_v33 = vld [vmem:[%s4480_s3 + $0x28] sm:$0xff] }
  0x18   :  { %404 = vmatpush1.msra.mxu1 %v2389_v16  ;;  %437 = vmatprep.mubr.f32.mxu1 %v4489_v20  ;;  %v141_v32 = vld [vmem:[%s4480_s3 + $0x58] sm:$0xff]  ;;  %v2897_v34 = vsel %vm109_vm0, %v79_v28, 0.0  ;;  %v80_v35 = vrot.slane %v2880_v30, 1  ;;  %v2904_v36 = vld [vmem:[%s4477_s0 + $0x20] sm:$0xff]  ;;  %v140_v37 = vld [vmem:[%s4480_s3 + $0x50] sm:$0xff] }
  0x19   :  { %2403 = vmatmul.mubr.msk.f32.vlgmr.msra.gmra.mxu0 %vm163_vm1, %v110_v21  ;;  %2419 = vmatmul.mubr.msk.f32.vlgmr.msra.gmra.mxu1 %vm163_vm1, %v110_v21  ;;  %v134_v38 = vld [vmem:[%s4480_s3 + $0x20] sm:$0xff]  ;;  %v137_v39 = vld [vmem:[%s4480_s3 + $0x38] sm:$0xff]  ;;  %v131_v40 = vld [vmem:[%s4480_s3 + $0x8] sm:$0xff]  ;;  %v81_v42 = vrot.slane %v2904_v36, 1 }
  0x1a   :  { %590 = vmatprep.subr.mxu0 %v143_v22  ;;  %282 = vmatprep.mubr.f32.mxu0 %v4489_v20  ;;  %v2925_v41 = vsel %vm109_vm0, %v80_v35, 0.0  ;;  %v2931_v43 = vld [vmem:[%s4477_s0 + $0x28] sm:$0xff]  ;;  %v136_v44 = vld [vmem:[%s4480_s3 + $0x30] sm:$0xff]  ;;  %v130_v45 = vld [vmem:[%s4480_s3] sm:$0xff] }
  0x1b   :  { %591 = vmatpush1.msra.mxu0 %v142_v24  ;;  %443 = vmatprep.mubr.f32.mxu1 %v4489_v20  ;;  %v2563_v46 = vld [vmem:[%s4478_s1] sm:$0xff]   ;;  %v2594_v47 = vld [vmem:[%s4478_s1 + $0x8] sm:$0xff]   ;;  %v133_v48 = vld [vmem:[%s4480_s3 + $0x18] sm:$0xff]  ;;  %v2961_v53 = vsel %vm109_vm0, %v81_v42, 0.0  ;;  %v82_v54 = vrot.slane %v2931_v43, 1 }
  0x1c   :  { %751 = vmatprep.subr.mxu1 %v145_v25  ;;  %592 = vmatprep.subr.mxu0 %v139_v26  ;;  %v2480_v49 = vld [vmem:[%s4480_s3 + $0x168] sm:$0xff]  ;;  %v2564_v50 = vunpack.c.l.bf16 %v2563_v46  ;;  %v2565_v51 = vunpack.c.h.bf16 %v2563_v46  ;;  %v2597_v52 = vld [vmem:[%s4478_s1 + $0x20] sm:$0xff]   ;;  %v2970_v56 = vld [vmem:[%s4477_s0 + $0x30] sm:$0xff]  ;;  %v2568_v57 = vunpack.c.l.bf16 %v2594_v47  ;;  %v2569_v1 = vunpack.c.h.bf16 %v2594_v47 }
  0x1d   :  { %2404 = vmatmul.mubr.msk.f32.gmra.mxu0 %vm163_vm1, %v2870_v27  ;;  %2420 = vmatmul.mubr.msk.f32.gmra.mxu1 %vm163_vm1, %v2870_v27  ;;  %v2598_v55 = vld [vmem:[%s4478_s1 + $0x28] sm:$0xff]   ;;  %v2580_v58 = vunpack.c.l.bf16 %v2597_v52  ;;  %v2581_v59 = vunpack.c.h.bf16 %v2597_v52  ;;  %v132_v61 = vld [vmem:[%s4480_s3 + $0x10] sm:$0xff]  ;;  %v2482_v0 = vld [vmem:[%s4480_s3 + $0x178] sm:$0xff]  ;;  %v2991_v5 = vsel %vm109_vm0, %v82_v54, 0.0  ;;  %v83_v6 = vrot.slane %v2970_v56, 1 }
  0x1e   :  { %752 = vmatpush1.msra.mxu1 %v144_v29  ;;  %288 = vmatprep.mubr.f32.mxu0 %v4489_v20  ;;  %v2584_v60 = vunpack.c.l.bf16 %v2598_v55  ;;  %v2595_v62 = vld [vmem:[%s4478_s1 + $0x10] sm:$0xff]   ;;  %v2585_v2 = vunpack.c.h.bf16 %v2598_v55  ;;  %v2123_v3 = vadd.f32 %v2565_v51, %v2564_v50  ;;  %v2997_v7 = vld [vmem:[%s4477_s0 + $0x38] sm:$0xff]  ;;  %v3018_v24 = vld [vmem:[%s4477_s0 + $0x40] sm:$0xff] }
  0x1f   :  { %449 = vmatprep.mubr.f32.mxu1 %v4489_v20  ;;  %593 = vmatpush1.msra.mxu0 %v138_v31  ;;  %v2599_v63 = vld [vmem:[%s4478_s1 + $0x30] sm:$0xff]   ;;  %v2136_v4 = vadd.f32 %v2581_v59, %v2580_v58  ;;  %v2572_v8 = vunpack.c.l.bf16 %v2595_v62  ;;  %v2596_v12 = vld [vmem:[%s4478_s1 + $0x18] sm:$0xff]   ;;  %v2573_v14 = vunpack.c.h.bf16 %v2595_v62  ;;  %v3012_v21 = vsel %vm109_vm0, %v83_v6, 0.0 }
  0x20   :  { %753 = vmatprep.subr.mxu1 %v141_v32  ;;  %594 = vmatprep.subr.mxu0 %v135_v33  ;;  %v2588_v9 = vunpack.c.l.bf16 %v2599_v63  ;;  %v2124_v10 = vadd.f32 %v2568_v57, %v2123_v3  ;;  %v2600_v13 = vld [vmem:[%s4478_s1 + $0x38] sm:$0xff]   ;;  %v2589_v16 = vunpack.c.h.bf16 %v2599_v63  ;;  %v84_v22 = vrot.slane %v2997_v7, 1 }
  0x21   :  { %2405 = vmatmul.mubr.msk.f32.gmra.mxu0 %vm163_vm1, %v2897_v34  ;;  %2421 = vmatmul.mubr.msk.f32.gmra.mxu1 %vm163_vm1, %v2897_v34  ;;  %v2137_v11 = vadd.f32 %v2584_v60, %v2136_v4  ;;  %v2576_v25 = vunpack.c.l.bf16 %v2596_v12  ;;  %v2592_v26 = vunpack.c.l.bf16 %v2600_v13  ;;  %v2577_v31 = vunpack.c.h.bf16 %v2596_v12  ;;  %v3059_v57 = vld [vmem:[%s4477_s0 + $0x58] sm:$0xff] }
  0x22   :  { %294 = vmatprep.mubr.f32.mxu0 %v4489_v20  ;;  %455 = vmatprep.mubr.f32.mxu1 %v4489_v20  ;;  %v2125_v17 = vadd.f32 %v2569_v1, %v2124_v10  ;;  %v2593_v32 = vunpack.c.h.bf16 %v2600_v13  ;;  %v88_v63 = vrot.slane %v3059_v57, 1  ;;  %v3111_v13 = vld [vmem:[%s4477_s0 + $0x70] sm:$0xff] }
  0x23   :  { %754 = vmatpush1.msra.mxu1 %v140_v37  ;;  %595 = vmatpush1.msra.mxu0 %v134_v38  ;;  %v2138_v19 = vadd.f32 %v2585_v2, %v2137_v11  ;;  %v3027_v37 = vsel %vm109_vm0, %v84_v22, 0.0  ;;  %v85_v38 = vrot.slane %v3018_v24, 1 }
  0x24   :  { %755 = vmatprep.subr.mxu1 %v137_v39  ;;  %596 = vmatprep.subr.mxu0 %v131_v40  ;;  %v2126_v28 = vadd.f32 %v2572_v8, %v2125_v17  ;;  %v3033_v39 = vld [vmem:[%s4477_s0 + $0x48] sm:$0xff]  ;;  %v3087_v6 = vsel %vm109_vm0, %v88_v63, 0.0  ;;  %v3126_v17 = vld [vmem:[%s4477_s0 + $0x78] sm:$0xff] }
  0x25   :  { %2406 = vmatmul.mubr.msk.f32.gmra.mxu0 %vm163_vm1, %v2925_v41  ;;  %2422 = vmatmul.mubr.msk.f32.gmra.mxu1 %vm163_vm1, %v2925_v41  ;;  %v2139_v29 = vadd.f32 %v2588_v9, %v2138_v19  ;;  %v118_v46 = vsel %vm109_vm0, %v85_v38, 0.0  ;;  %v86_v47 = vrot.slane %v3033_v39, 1  ;;  %v3093_v9 = vld [vmem:[%s4477_s0 + $0x68] sm:$0xff]  ;;  %v92_v22 = vrot.slane %v3126_v17, 1  ;;  %v2471_v38 = vld [vmem:[%s4480_s3 + $0x120] sm:$0xff]  ;;  %v2514_v63 = vld [vmem:[%s4480_s3 + $0x198] sm:$0xff] }
  0x26   :  { %300 = vmatprep.mubr.f32.mxu0 %v4489_v20  ;;  %461 = vmatprep.mubr.f32.mxu1 %v4489_v20  ;;  %v2127_v33 = vadd.f32 %v2573_v14, %v2126_v28  ;;  %v90_v12 = vrot.slane %v3093_v9, 1  ;;  %v2481_v28 = vld [vmem:[%s4480_s3 + $0x170] sm:$0xff] }
  0x27   :  { %756 = vmatpush1.msra.mxu1 %v136_v44  ;;  %597 = vmatpush1.msra.mxu0 %v130_v45  ;;  %v2140_v35 = vadd.f32 %v2589_v16, %v2139_v29  ;;  %v3053_v54 = vsel %vm109_vm0, %v86_v47, 0.0  ;;  %v91_v16 = vrot.slane %v3111_v13, 1  ;;  %v2476_v29 = vld [vmem:[%s4480_s3 + $0x148] sm:$0xff] }
  0x28   :  { %757 = vmatprep.subr.mxu1 %v133_v48  ;;  %931 = vmatprep.subr.mxu0 %v2480_v49  ;;  %v2128_v40 = vadd.f32 %v2576_v25, %v2127_v33  ;;  %v3046_v48 = vld [vmem:[%s4477_s0 + $0x50] sm:$0xff]  ;;  %v3120_v14 = vsel %vm109_vm0, %v90_v12, 0.0  ;;  %v3145_v25 = vsel %vm109_vm0, %v92_v22, 0.0  ;;  %v2472_v33 = vld [vmem:[%s4480_s3 + $0x128] sm:$0xff] }
  0x29   :  { %2407 = vmatmul.mubr.msk.f32.gmra.mxu0 %vm163_vm1, %v2961_v53  ;;  %2423 = vmatmul.mubr.msk.f32.gmra.mxu1 %vm163_vm1, %v2961_v53  ;;  %v2141_v42 = vadd.f32 %v2592_v26, %v2140_v35  ;;  %v87_v55 = vrot.slane %v3046_v48, 1  ;;  %v3135_v19 = vsel %vm109_vm0, %v91_v16, 0.0  ;;  %v2479_v26 = vld [vmem:[%s4480_s3 + $0x160] sm:$0xff]  ;;  %v2474_v35 = vld [vmem:[%s4480_s3 + $0x138] sm:$0xff]  ;;  %v2524_v47 = vld [vmem:[%s4480_s3 + $0x1e8] sm:$0xff] }
  0x2a   :  { %306 = vmatprep.mubr.f32.mxu0 %v4489_v20  ;;  %467 = vmatprep.mubr.f32.mxu1 %v4489_v20  ;;  %v2129_v44 = vadd.f32 %v2577_v31, %v2128_v40  ;;  %v2478_v31 = vld [vmem:[%s4480_s3 + $0x158] sm:$0xff]  ;;  %v2473_v40 = vld [vmem:[%s4480_s3 + $0x130] sm:$0xff] }
  0x2b   :  { %758 = vmatpush1.msra.mxu1 %v132_v61  ;;  %v2142_v45 = vadd.f32 %v2593_v32, %v2141_v42  ;;  %v3068_v62 = vsel %vm109_vm0, %v87_v55, 0.0  ;;  %v2475_v32 = vld [vmem:[%s4480_s3 + $0x140] sm:$0xff]  ;;  %v2468_v42 = vld [vmem:[%s4480_s3 + $0x108] sm:$0xff] }
  0x2c   :  { %1092 = vmatprep.subr.mxu1 %v2482_v0  ;;  %v2130_v49 = vrot.slane %v2129_v44, 4  ;;  %v3074_v0 = vld [vmem:[%s4477_s0 + $0x60] sm:$0xff] }
  0x2d   :  { %2408 = vmatmul.mubr.msk.f32.gmra.mxu0 %vm163_vm1, %v2991_v5  ;;  %2424 = vmatmul.mubr.msk.f32.gmra.mxu1 %vm163_vm1, %v2991_v5  ;;  %v2143_v50 = vrot.slane %v2142_v45, 4  ;;  %v89_v8 = vrot.slane %v3074_v0, 1  ;;  %v2519_v55 = vld [vmem:[%s4480_s3 + $0x1c0] sm:$0xff] }
  0x2e   :  { %312 = vmatprep.mubr.f32.mxu0 %v4489_v20  ;;  %473 = vmatprep.mubr.f32.mxu1 %v4489_v20  ;;  %v2131_v51 = vadd.f32 %v2130_v49, %v2129_v44  ;;  %v2470_v44 = vld [vmem:[%s4480_s3 + $0x118] sm:$0xff] }
  0x2f   :  { %v2144_v52 = vadd.f32 %v2143_v50, %v2142_v45  ;;  %v3105_v11 = vsel %vm109_vm0, %v89_v8, 0.0  ;;  %v2467_v45 = vld [vmem:[%s4480_s3 + $0x100] sm:$0xff]  ;;  %v2526_v49 = vld [vmem:[%s4480_s3 + $0x1f8] sm:$0xff]  ;;  %v2525_v50 = vld [vmem:[%s4480_s3 + $0x1f0] sm:$0xff] }
  0x30   :  { %v2132_v58 = vrot.slane %v2131_v51, 2 }
  0x31   :  { %2409 = vmatmul.mubr.msk.f32.gmra.mxu0 %vm163_vm1, %v3012_v21  ;;  %2425 = vmatmul.mubr.msk.f32.gmra.mxu1 %vm163_vm1, %v3012_v21  ;;  %v2145_v59 = vrot.slane %v2144_v52, 2 }
  0x32   :  { %318 = vmatprep.mubr.f32.mxu0 %v4489_v20  ;;  %479 = vmatprep.mubr.f32.mxu1 %v4489_v20  ;;  %v2133_v60 = vadd.f32 %v2132_v58, %v2131_v51  ;;  %v2520_v51 = vld [vmem:[%s4480_s3 + $0x1c8] sm:$0xff] }
  0x33   :  { %v2146_v61 = vadd.f32 %v2145_v59, %v2144_v52  ;;  %v2522_v52 = vld [vmem:[%s4480_s3 + $0x1d8] sm:$0xff]  ;;  %v2516_v58 = vld [vmem:[%s4480_s3 + $0x1a8] sm:$0xff] }
  0x34   :  { %v2134_v1 = vrot.slane %v2133_v60, 1  ;;  %v2518_v59 = vld [vmem:[%s4480_s3 + $0x1b8] sm:$0xff] }
  0x35   :  { %2410 = vmatmul.mubr.msk.f32.gmra.mxu0 %vm163_vm1, %v3027_v37  ;;  %2426 = vmatmul.mubr.msk.f32.gmra.mxu1 %vm163_vm1, %v3027_v37  ;;  %v2147_v2 = vrot.slane %v2146_v61, 1 }
  0x36   :  { %324 = vmatprep.mubr.f32.mxu0 %v4489_v20  ;;  %485 = vmatprep.mubr.f32.mxu1 %v4489_v20  ;;  %v3080_v3 = vadd.f32 %v2134_v1, %v2133_v60  ;;  %v2515_v60 = vld [vmem:[%s4480_s3 + $0x1a0] sm:$0xff] }
  0x37   :  { %v3082_v4 = vadd.f32 %v2147_v2, %v2146_v61  ;;  %v2512_v61 = vld [vmem:[%s4480_s3 + $0x188] sm:$0xff]  ;;  %v2511_v1 = vld [vmem:[%s4480_s3 + $0x180] sm:$0xff] }
  0x39   :  { %2411 = vmatmul.mubr.msk.f32.gmra.mxu0 %vm163_vm1, %v118_v46  ;;  %2427 = vmatmul.mubr.msk.f32.gmra.mxu1 %vm163_vm1, %v118_v46  ;;  %v2152_v10 = vsel %vm2151_vm2, %v3082_v4, %v3080_v3  ;;  %v2469_v46 = vld [vmem:[%s4480_s3 + $0x110] sm:$0xff] }
  0x3a   :  { %330 = vmatprep.mubr.f32.mxu0 %v4489_v20  ;;  %491 = vmatprep.mubr.f32.mxu1 %v4489_v20 }
  0x3b   :  { %2154 = vrot.lane.b32.xlu0 %v2152_v10, %s2730_s15 }
  0x3d   :  { %2412 = vmatmul.mubr.msk.f32.gmra.mxu0 %vm163_vm1, %v3053_v54  ;;  %2428 = vmatmul.mubr.msk.f32.gmra.mxu1 %vm163_vm1, %v3053_v54 }
  0x3e   :  { %336 = vmatprep.mubr.f32.mxu0 %v4489_v20  ;;  %497 = vmatprep.mubr.f32.mxu1 %v4489_v20 }
  0x41   :  { %2413 = vmatmul.mubr.msk.f32.gmra.mxu0 %vm163_vm1, %v3068_v62  ;;  %2429 = vmatmul.mubr.msk.f32.gmra.mxu1 %vm163_vm1, %v3068_v62 }
  0x42   :  { %342 = vmatprep.mubr.f32.mxu0 %v4489_v20  ;;  %503 = vmatprep.mubr.f32.mxu1 %v4489_v20 }
  0x45   :  { %2414 = vmatmul.mubr.msk.f32.gmra.mxu0 %vm163_vm1, %v3087_v6  ;;  %2430 = vmatmul.mubr.msk.f32.gmra.mxu1 %vm163_vm1, %v3087_v6 }
  0x46   :  { %348 = vmatprep.mubr.f32.mxu0 %v4489_v20  ;;  %509 = vmatprep.mubr.f32.mxu1 %v4489_v20 }
  0x49   :  { %2415 = vmatmul.mubr.msk.f32.gmra.mxu0 %vm163_vm1, %v3105_v11  ;;  %2431 = vmatmul.mubr.msk.f32.gmra.mxu1 %vm163_vm1, %v3105_v11 }
  0x4a   :  { %354 = vmatprep.mubr.f32.mxu0 %v4489_v20  ;;  %515 = vmatprep.mubr.f32.mxu1 %v4489_v20 }
  0x4d   :  { %2416 = vmatmul.mubr.msk.f32.gmra.mxu0 %vm163_vm1, %v3120_v14  ;;  %2432 = vmatmul.mubr.msk.f32.gmra.mxu1 %vm163_vm1, %v3120_v14 }
  0x4e   :  { %360 = vmatprep.mubr.f32.mxu0 %v4489_v20  ;;  %521 = vmatprep.mubr.f32.mxu1 %v4489_v20 }
  0x51   :  { %2417 = vmatmul.mubr.msk.f32.gmra.mxu0 %vm163_vm1, %v3135_v19  ;;  %2433 = vmatmul.mubr.msk.f32.gmra.mxu1 %vm163_vm1, %v3135_v19 }
  0x52   :  { %366 = vmatprep.mubr.f32.mxu0 %v4489_v20  ;;  %527 = vmatprep.mubr.f32.mxu1 %v4489_v20 }
  0x55   :  { %2418 = vmatmul.mubr.msk.f32.gmra.mxu0 %vm163_vm1, %v3145_v25  ;;  %2434 = vmatmul.mubr.msk.f32.gmra.mxu1 %vm163_vm1, %v3145_v25 }
  0x56   :  { %630 = vmatprep.mubr.f32.mxu0 %v4489_v20  ;;  %791 = vmatprep.mubr.f32.mxu1 %v4489_v20 }
  0x59   :  { %2435 = vmatmul.mubr.msk.f32.vlgmr.msra.gmra.mxu0 %vm163_vm1, %v2834_v15  ;;  %2451 = vmatmul.mubr.msk.f32.vlgmr.msra.gmra.mxu1 %vm163_vm1, %v2834_v15  ;;  %v2477_v15 = vld [vmem:[%s4480_s3 + $0x150] sm:$0xff] }
  0x5a   :  { %932 = vmatpush1.msra.mxu0 %v2479_v26  ;;  %636 = vmatprep.mubr.f32.mxu0 %v4489_v20 }
  0x5b   :  { %797 = vmatprep.mubr.f32.mxu1 %v4489_v20  ;;  %1093 = vmatpush1.msra.mxu1 %v2481_v28 }
  0x5c   :  { %933 = vmatprep.subr.mxu0 %v2476_v29  ;;  %1094 = vmatprep.subr.mxu1 %v2478_v31 }
  0x5d   :  { %2436 = vmatmul.mubr.msk.f32.gmra.mxu0 %vm163_vm1, %v2843_v18  ;;  %2452 = vmatmul.mubr.msk.f32.gmra.mxu1 %vm163_vm1, %v2843_v18 }
  0x5e   :  { %642 = vmatprep.mubr.f32.mxu0 %v4489_v20  ;;  %803 = vmatprep.mubr.f32.mxu1 %v4489_v20 }
  0x5f   :  { %934 = vmatpush1.msra.mxu0 %v2475_v32  ;;  %1095 = vmatpush1.msra.mxu1 %v2477_v15 }
  0x60   :  { %935 = vmatprep.subr.mxu0 %v2472_v33  ;;  %1096 = vmatprep.subr.mxu1 %v2474_v35 }
  0x61   :  { %2437 = vmatmul.mubr.msk.f32.gmra.mxu0 %vm163_vm1, %v2854_v23  ;;  %2453 = vmatmul.mubr.msk.f32.gmra.mxu1 %vm163_vm1, %v2854_v23 }
  0x62   :  { %648 = vmatprep.mubr.f32.mxu0 %v4489_v20  ;;  %809 = vmatprep.mubr.f32.mxu1 %v4489_v20 }
  0x63   :  { %936 = vmatpush1.msra.mxu0 %v2471_v38  ;;  %1097 = vmatpush1.msra.mxu1 %v2473_v40 }
  0x64   :  { %937 = vmatprep.subr.mxu0 %v2468_v42  ;;  %1098 = vmatprep.subr.mxu1 %v2470_v44 }
  0x65   :  { %2438 = vmatmul.mubr.msk.f32.gmra.mxu0 %vm163_vm1, %v2880_v30  ;;  %2454 = vmatmul.mubr.msk.f32.gmra.mxu1 %vm163_vm1, %v2880_v30 }
  0x66   :  { %654 = vmatprep.mubr.f32.mxu0 %v4489_v20  ;;  %815 = vmatprep.mubr.f32.mxu1 %v4489_v20 }
  0x67   :  { %938 = vmatpush1.msra.mxu0 %v2467_v45  ;;  %1099 = vmatpush1.msra.mxu1 %v2469_v46 }
  0x68   :  { %1337 = vmatprep.subr.mxu0 %v2524_v47  ;;  %1498 = vmatprep.subr.mxu1 %v2526_v49 }
  0x69   :  { %2439 = vmatmul.mubr.msk.f32.gmra.mxu0 %vm163_vm1, %v2904_v36  ;;  %2455 = vmatmul.mubr.msk.f32.gmra.mxu1 %vm163_vm1, %v2904_v36 }
  0x6a   :  { %660 = vmatprep.mubr.f32.mxu0 %v4489_v20  ;;  %821 = vmatprep.mubr.f32.mxu1 %v4489_v20 }
  0x6d   :  { %2440 = vmatmul.mubr.msk.f32.gmra.mxu0 %vm163_vm1, %v2931_v43  ;;  %2456 = vmatmul.mubr.msk.f32.gmra.mxu1 %vm163_vm1, %v2931_v43 }
  0x6e   :  { %666 = vmatprep.mubr.f32.mxu0 %v4489_v20  ;;  %827 = vmatprep.mubr.f32.mxu1 %v4489_v20 }
  0x71   :  { %2441 = vmatmul.mubr.msk.f32.gmra.mxu0 %vm163_vm1, %v2970_v56  ;;  %2457 = vmatmul.mubr.msk.f32.gmra.mxu1 %vm163_vm1, %v2970_v56 }
  0x72   :  { %672 = vmatprep.mubr.f32.mxu0 %v4489_v20  ;;  %833 = vmatprep.mubr.f32.mxu1 %v4489_v20 }
  0x75   :  { %2442 = vmatmul.mubr.msk.f32.gmra.mxu0 %vm163_vm1, %v2997_v7  ;;  %2458 = vmatmul.mubr.msk.f32.gmra.mxu1 %vm163_vm1, %v2997_v7 }
  0x76   :  { %678 = vmatprep.mubr.f32.mxu0 %v4489_v20  ;;  %839 = vmatprep.mubr.f32.mxu1 %v4489_v20 }
  0x79   :  { %2443 = vmatmul.mubr.msk.f32.gmra.mxu0 %vm163_vm1, %v3018_v24  ;;  %2459 = vmatmul.mubr.msk.f32.gmra.mxu1 %vm163_vm1, %v3018_v24  ;;  %v2523_v24 = vld [vmem:[%s4480_s3 + $0x1e0] sm:$0xff] }
  0x7a   :  { %684 = vmatprep.mubr.f32.mxu0 %v4489_v20  ;;  %845 = vmatprep.mubr.f32.mxu1 %v4489_v20 }
  0x7d   :  { %2444 = vmatmul.mubr.msk.f32.gmra.mxu0 %vm163_vm1, %v3033_v39  ;;  %2460 = vmatmul.mubr.msk.f32.gmra.mxu1 %vm163_vm1, %v3033_v39 }
  0x7e   :  { %690 = vmatprep.mubr.f32.mxu0 %v4489_v20  ;;  %851 = vmatprep.mubr.f32.mxu1 %v4489_v20 }
  0x81   :  { %2445 = vmatmul.mubr.msk.f32.gmra.mxu0 %vm163_vm1, %v3046_v48  ;;  %2461 = vmatmul.mubr.msk.f32.gmra.mxu1 %vm163_vm1, %v3046_v48 }
  0x82   :  { %696 = vmatprep.mubr.f32.mxu0 %v4489_v20  ;;  %857 = vmatprep.mubr.f32.mxu1 %v4489_v20 }
  0x85   :  { %2446 = vmatmul.mubr.msk.f32.gmra.mxu0 %vm163_vm1, %v3059_v57  ;;  %2462 = vmatmul.mubr.msk.f32.gmra.mxu1 %vm163_vm1, %v3059_v57 }
  0x86   :  { %702 = vmatprep.mubr.f32.mxu0 %v4489_v20  ;;  %863 = vmatprep.mubr.f32.mxu1 %v4489_v20 }
  0x89   :  { %2447 = vmatmul.mubr.msk.f32.gmra.mxu0 %vm163_vm1, %v3074_v0  ;;  %2463 = vmatmul.mubr.msk.f32.gmra.mxu1 %vm163_vm1, %v3074_v0 }
  0x8a   :  { %708 = vmatprep.mubr.f32.mxu0 %v4489_v20  ;;  %869 = vmatprep.mubr.f32.mxu1 %v4489_v20 }
  0x8d   :  { %2448 = vmatmul.mubr.msk.f32.gmra.mxu0 %vm163_vm1, %v3093_v9  ;;  %2464 = vmatmul.mubr.msk.f32.gmra.mxu1 %vm163_vm1, %v3093_v9 }
  0x8e   :  { %714 = vmatprep.mubr.f32.mxu0 %v4489_v20  ;;  %875 = vmatprep.mubr.f32.mxu1 %v4489_v20 }
  0x91   :  { %2449 = vmatmul.mubr.msk.f32.gmra.mxu0 %vm163_vm1, %v3111_v13  ;;  %2465 = vmatmul.mubr.msk.f32.gmra.mxu1 %vm163_vm1, %v3111_v13 }
  0x92   :  { %720 = vmatprep.mubr.f32.mxu0 %v4489_v20  ;;  %881 = vmatprep.mubr.f32.mxu1 %v4489_v20 }
  0x95   :  { %2450 = vmatmul.mubr.msk.f32.gmra.mxu0 %vm163_vm1, %v3126_v17  ;;  %2466 = vmatmul.mubr.msk.f32.gmra.mxu1 %vm163_vm1, %v3126_v17 }
  0x96   :  { %971 = vmatprep.mubr.f32.mxu0 %v4489_v20  ;;  %1132 = vmatprep.mubr.f32.mxu1 %v4489_v20 }
  0x99   :  { %2483 = vmatmul.mubr.msk.f32.vlgmr.msra.gmra.mxu0 %vm163_vm1, %v2843_v18  ;;  %2497 = vmatmul.mubr.msk.f32.vlgmr.msra.gmra.mxu1 %vm163_vm1, %v2843_v18  ;;  %v2521_v18 = vld [vmem:[%s4480_s3 + $0x1d0] sm:$0xff] }
  0x9a   :  { %1338 = vmatpush1.msra.mxu0 %v2523_v24  ;;  %977 = vmatprep.mubr.f32.mxu0 %v4489_v20 }
  0x9b   :  { %1138 = vmatprep.mubr.f32.mxu1 %v4489_v20  ;;  %1499 = vmatpush1.msra.mxu1 %v2525_v50 }
  0x9c   :  { %1339 = vmatprep.subr.mxu0 %v2520_v51  ;;  %1500 = vmatprep.subr.mxu1 %v2522_v52 }
  0x9d   :  { %2484 = vmatmul.mubr.msk.f32.gmra.mxu0 %vm163_vm1, %v2854_v23  ;;  %2498 = vmatmul.mubr.msk.f32.gmra.mxu1 %vm163_vm1, %v2854_v23  ;;  %v2517_v23 = vld [vmem:[%s4480_s3 + $0x1b0] sm:$0xff] }
  0x9e   :  { %983 = vmatprep.mubr.f32.mxu0 %v4489_v20  ;;  %1144 = vmatprep.mubr.f32.mxu1 %v4489_v20 }
  0x9f   :  { %1340 = vmatpush1.msra.mxu0 %v2519_v55  ;;  %1501 = vmatpush1.msra.mxu1 %v2521_v18 }
  0xa0   :  { %1341 = vmatprep.subr.mxu0 %v2516_v58  ;;  %1502 = vmatprep.subr.mxu1 %v2518_v59 }
  0xa1   :  { %2485 = vmatmul.mubr.msk.f32.gmra.mxu0 %vm163_vm1, %v2880_v30  ;;  %2499 = vmatmul.mubr.msk.f32.gmra.mxu1 %vm163_vm1, %v2880_v30  ;;  %v2513_v30 = vld [vmem:[%s4480_s3 + $0x190] sm:$0xff]  ;;  %s2731_s3 = smov 32  }
  0xa2   :  { %989 = vmatprep.mubr.f32.mxu0 %v4489_v20  ;;  %1150 = vmatprep.mubr.f32.mxu1 %v4489_v20 }
  0xa3   :  { %1342 = vmatpush1.msra.mxu0 %v2515_v60  ;;  %1503 = vmatpush1.msra.mxu1 %v2517_v23 }
  0xa4   :  { %1343 = vmatprep.subr.mxu0 %v2512_v61  ;;  %1504 = vmatprep.subr.mxu1 %v2514_v63 }
  0xa5   :  { %2486 = vmatmul.mubr.msk.f32.gmra.mxu0 %vm163_vm1, %v2904_v36  ;;  %2500 = vmatmul.mubr.msk.f32.gmra.mxu1 %vm163_vm1, %v2904_v36 }
  0xa6   :  { %995 = vmatprep.mubr.f32.mxu0 %v4489_v20  ;;  %1156 = vmatprep.mubr.f32.mxu1 %v4489_v20 }
  0xa7   :  { %1344 = vmatpush1.msra.mxu0 %v2511_v1  ;;  %1505 = vmatpush1.msra.mxu1 %v2513_v30 }
  0xa8   :  { %2635 = vmatprep.subr.mxu0 %v4489_v20  ;;  %2670 = vmatprep.subr.mxu1 %v4489_v20 }
  0xa9   :  { %2487 = vmatmul.mubr.msk.f32.gmra.mxu0 %vm163_vm1, %v2931_v43  ;;  %2501 = vmatmul.mubr.msk.f32.gmra.mxu1 %vm163_vm1, %v2931_v43 }
  0xaa   :  { %1001 = vmatprep.mubr.f32.mxu0 %v4489_v20  ;;  %1162 = vmatprep.mubr.f32.mxu1 %v4489_v20 }
  0xad   :  { %2488 = vmatmul.mubr.msk.f32.gmra.mxu0 %vm163_vm1, %v2970_v56  ;;  %2502 = vmatmul.mubr.msk.f32.gmra.mxu1 %vm163_vm1, %v2970_v56  ;;  %v2155_v36 = vpop.permute.xlu0 %2154 }
  0xae   :  { %1007 = vmatprep.mubr.f32.mxu0 %v4489_v20  ;;  %1168 = vmatprep.mubr.f32.mxu1 %v4489_v20  ;;  %v2157_v43 = vrot.slane %v2155_v36, 1  ;;  %v3392_v56 = vadd.f32 %v2155_v36, %v3080_v3 }
  0xb0   :  { %4491 = vst [vmem:[#allocation5_spill] sm:$0xff] %v3392_v56 }
  0xb1   :  { %2489 = vmatmul.mubr.msk.f32.gmra.mxu0 %vm163_vm1, %v2997_v7  ;;  %2503 = vmatmul.mubr.msk.f32.gmra.mxu1 %vm163_vm1, %v2997_v7  ;;  %v3395_v7 = vadd.f32 %v2157_v43, %v3082_v4 }
  0xb2   :  { %1013 = vmatprep.mubr.f32.mxu0 %v4489_v20  ;;  %1174 = vmatprep.mubr.f32.mxu1 %v4489_v20 }
  0xb3   :  { %4492 = vst [vmem:[#allocation6_spill] sm:$0xff] %v3395_v7  ;;  %v2164_v2 = vrot.slane %v3395_v7, 7 }
  0xb5   :  { %1014 = vmatmul.mubr.f32.gmra.mxu0 %v4489_v20  ;;  %1175 = vmatmul.mubr.f32.gmra.mxu1 %v4489_v20 }
  0xb6   :  { %1019 = vmatprep.mubr.f32.mxu0 %v4489_v20  ;;  %1180 = vmatprep.mubr.f32.mxu1 %v4489_v20 }
  0xb9   :  { %2490 = vmatmul.mubr.msk.f32.gmra.mxu0 %vm163_vm1, %v3033_v39  ;;  %2504 = vmatmul.mubr.msk.f32.gmra.mxu1 %vm163_vm1, %v3033_v39  ;;  %v2165_v39 = vsel %vm2151_vm2, %v2164_v2, %v3392_v56 }
  0xba   :  { %1025 = vmatprep.mubr.f32.mxu0 %v4489_v20  ;;  %1186 = vmatprep.mubr.f32.mxu1 %v4489_v20 }
  0xbb   :  { %2167 = vrot.lane.b32.xlu0 %v2165_v39, %s2731_s3 }
  0xbd   :  { %2491 = vmatmul.mubr.msk.f32.gmra.mxu0 %vm163_vm1, %v3046_v48  ;;  %2505 = vmatmul.mubr.msk.f32.gmra.mxu1 %vm163_vm1, %v3046_v48 }
  0xbe   :  { %1031 = vmatprep.mubr.f32.mxu0 %v4489_v20  ;;  %1192 = vmatprep.mubr.f32.mxu1 %v4489_v20 }
  0xc1   :  { %2492 = vmatmul.mubr.msk.f32.gmra.mxu0 %vm163_vm1, %v3059_v57  ;;  %2506 = vmatmul.mubr.msk.f32.gmra.mxu1 %vm163_vm1, %v3059_v57 }
  0xc2   :  { %1037 = vmatprep.mubr.f32.mxu0 %v4489_v20  ;;  %1198 = vmatprep.mubr.f32.mxu1 %v4489_v20 }
  0xc5   :  { %2493 = vmatmul.mubr.msk.f32.gmra.mxu0 %vm163_vm1, %v3074_v0  ;;  %2507 = vmatmul.mubr.msk.f32.gmra.mxu1 %vm163_vm1, %v3074_v0 }
  0xc6   :  { %1043 = vmatprep.mubr.f32.mxu0 %v4489_v20  ;;  %1204 = vmatprep.mubr.f32.mxu1 %v4489_v20 }
  0xc9   :  { %2494 = vmatmul.mubr.msk.f32.gmra.mxu0 %vm163_vm1, %v3093_v9  ;;  %2508 = vmatmul.mubr.msk.f32.gmra.mxu1 %vm163_vm1, %v3093_v9 }
  0xca   :  { %1049 = vmatprep.mubr.f32.mxu0 %v4489_v20  ;;  %1210 = vmatprep.mubr.f32.mxu1 %v4489_v20 }
  0xcd   :  { %2495 = vmatmul.mubr.msk.f32.gmra.mxu0 %vm163_vm1, %v3111_v13  ;;  %2509 = vmatmul.mubr.msk.f32.gmra.mxu1 %vm163_vm1, %v3111_v13 }
  0xce   :  { %1055 = vmatprep.mubr.f32.mxu0 %v4489_v20  ;;  %1216 = vmatprep.mubr.f32.mxu1 %v4489_v20 }
  0xd1   :  { %2496 = vmatmul.mubr.msk.f32.gmra.mxu0 %vm163_vm1, %v3126_v17  ;;  %2510 = vmatmul.mubr.msk.f32.gmra.mxu1 %vm163_vm1, %v3126_v17 }
  0xd2   :  { %1061 = vmatprep.mubr.f32.mxu0 %v4489_v20  ;;  %1222 = vmatprep.mubr.f32.mxu1 %v4489_v20 }
  0xd5   :  { %1062 = vmatmul.mubr.f32.gmra.mxu0 %v4489_v20  ;;  %1223 = vmatmul.mubr.f32.gmra.mxu1 %v4489_v20 }
  0xd6   :  { %1377 = vmatprep.mubr.f32.mxu0 %v4489_v20  ;;  %1538 = vmatprep.mubr.f32.mxu1 %v4489_v20 }
  0xd9   :  { %v3442_v48 = vpop.f32.mrf.mxu0  ;;  %v3444_v57 = vpop.f32.mrf.mxu1  ;;  %2527 = vmatmul.mubr.msk.f32.vlgmr.msra.gmra.mxu0 %vm163_vm1, %v2870_v27  ;;  %2543 = vmatmul.mubr.msk.f32.vlgmr.msra.gmra.mxu1 %vm163_vm1, %v2870_v27 }
  0xda   :  { %1383 = vmatprep.mubr.f32.mxu0 %v4489_v20  ;;  %1544 = vmatprep.mubr.f32.mxu1 %v4489_v20 }
  0xdb   :  { %v3452_v0 = vpop.f32.mrf.mxu0  ;;  %v3454_v3 = vpop.f32.mrf.mxu1 }
  0xdd   :  { %v3456_v4 = vpop.f32.mrf.mxu0  ;;  %v3458_v8 = vpop.f32.mrf.mxu1  ;;  %2528 = vmatmul.mubr.msk.f32.gmra.mxu0 %vm163_vm1, %v2897_v34  ;;  %2544 = vmatmul.mubr.msk.f32.gmra.mxu1 %vm163_vm1, %v2897_v34 }
  0xde   :  { %1389 = vmatprep.mubr.f32.mxu0 %v4489_v20  ;;  %1550 = vmatprep.mubr.f32.mxu1 %v4489_v20 }
  0xdf   :  { %v3466_v27 = vpop.f32.mrf.mxu0  ;;  %v3468_v9 = vpop.f32.mrf.mxu1 }
  0xe1   :  { %v3470_v10 = vpop.f32.mrf.mxu0  ;;  %v3472_v12 = vpop.f32.mrf.mxu1  ;;  %2529 = vmatmul.mubr.msk.f32.gmra.mxu0 %vm163_vm1, %v2925_v41  ;;  %2545 = vmatmul.mubr.msk.f32.gmra.mxu1 %vm163_vm1, %v2925_v41 }
  0xe2   :  { %1395 = vmatprep.mubr.f32.mxu0 %v4489_v20  ;;  %1556 = vmatprep.mubr.f32.mxu1 %v4489_v20 }
  0xe3   :  { %v3480_v34 = vpop.f32.mrf.mxu0  ;;  %v3482_v13 = vpop.f32.mrf.mxu1 }
  0xe5   :  { %v3484_v16 = vpop.f32.mrf.mxu0  ;;  %v3486_v17 = vpop.f32.mrf.mxu1  ;;  %2530 = vmatmul.mubr.msk.f32.gmra.mxu0 %vm163_vm1, %v2961_v53  ;;  %2546 = vmatmul.mubr.msk.f32.gmra.mxu1 %vm163_vm1, %v2961_v53 }
  0xe6   :  { %1401 = vmatprep.mubr.f32.mxu0 %v4489_v20  ;;  %1562 = vmatprep.mubr.f32.mxu1 %v4489_v20 }
  0xe7   :  { %v3494_v41 = vpop.f32.mrf.mxu0  ;;  %v3496_v22 = vpop.f32.mrf.mxu1 }
  0xe9   :  { %v3498_v26 = vpop.f32.mrf.mxu0  ;;  %v3500_v28 = vpop.f32.mrf.mxu1  ;;  %2531 = vmatmul.mubr.msk.f32.gmra.mxu0 %vm163_vm1, %v2991_v5  ;;  %2547 = vmatmul.mubr.msk.f32.gmra.mxu1 %vm163_vm1, %v2991_v5  ;;  %v127_v5 = vrot.slane %v4489_v20, 1 }
  0xea   :  { %1407 = vmatprep.mubr.f32.mxu0 %v4489_v20  ;;  %1568 = vmatprep.mubr.f32.mxu1 %v4489_v20 }
  0xeb   :  { %v3508_v53 = vpop.f32.mrf.mxu0  ;;  %v3510_v29 = vpop.f32.mrf.mxu1 }
  0xed   :  { %v3512_v31 = vpop.f32.mrf.mxu0  ;;  %v3514_v32 = vpop.f32.mrf.mxu1  ;;  %2532 = vmatmul.mubr.msk.f32.gmra.mxu0 %vm163_vm1, %v3012_v21  ;;  %2548 = vmatmul.mubr.msk.f32.gmra.mxu1 %vm163_vm1, %v3012_v21  ;;  %v3538_v21 = vsel %vm109_vm0, %v127_v5, 0.0 }
  0xee   :  { %1413 = vmatprep.mubr.f32.mxu0 %v4489_v20  ;;  %1574 = vmatprep.mubr.f32.mxu1 %v4489_v20 }
  0xef   :  { %v3523_v15 = vpop.f32.mrf.mxu0  ;;  %v3525_v33 = vpop.f32.mrf.mxu1 }
  0xf1   :  { %v3527_v35 = vpop.f32.mrf.mxu0  ;;  %v3529_v38 = vpop.f32.mrf.mxu1  ;;  %2533 = vmatmul.mubr.msk.f32.gmra.mxu0 %vm163_vm1, %v3027_v37  ;;  %2549 = vmatmul.mubr.msk.f32.gmra.mxu1 %vm163_vm1, %v3027_v37 }
  0xf2   :  { %1419 = vmatprep.mubr.f32.mxu0 %v4489_v20  ;;  %1580 = vmatprep.mubr.f32.mxu1 %v4489_v20 }
  0xf3   :  { %v3540_v40 = vpop.f32.mrf.mxu0  ;;  %v3542_v42 = vpop.f32.mrf.mxu1 }
  0xf5   :  { %v3544_v44 = vpop.f32.mrf.mxu0  ;;  %v3546_v45 = vpop.f32.mrf.mxu1  ;;  %2534 = vmatmul.mubr.msk.f32.gmra.mxu0 %vm163_vm1, %v3538_v21  ;;  %2550 = vmatmul.mubr.msk.f32.gmra.mxu1 %vm163_vm1, %v3538_v21 }
  0xf6   :  { %1425 = vmatprep.mubr.f32.mxu0 %v4489_v20  ;;  %1586 = vmatprep.mubr.f32.mxu1 %v4489_v20 }
  0xf7   :  { %v3554_v37 = vpop.f32.mrf.mxu0  ;;  %v3556_v46 = vpop.f32.mrf.mxu1 }
  0xf9   :  { %v3558_v47 = vpop.f32.mrf.mxu0  ;;  %v3560_v49 = vpop.f32.mrf.mxu1  ;;  %2535 = vmatmul.mubr.msk.f32.gmra.mxu0 %vm163_vm1, %v3053_v54  ;;  %2551 = vmatmul.mubr.msk.f32.gmra.mxu1 %vm163_vm1, %v3053_v54 }
  0xfa   :  { %1431 = vmatprep.mubr.f32.mxu0 %v4489_v20  ;;  %1592 = vmatprep.mubr.f32.mxu1 %v4489_v20 }
  0xfb   :  { %v3568_v24 = vpop.f32.mrf.mxu0  ;;  %v3570_v50 = vpop.f32.mrf.mxu1 }
  0xfc   :  { %4493 = vst [vmem:[#allocation7_spill] sm:$0xff] %v3568_v24  ;;  %4494 = vst [vmem:[#allocation8_spill] sm:$0xff] %v3570_v50 }
  0xfd   :  { %v3572_v51 = vpop.f32.mrf.mxu0  ;;  %v3574_v52 = vpop.f32.mrf.mxu1  ;;  %2536 = vmatmul.mubr.msk.f32.gmra.mxu0 %vm163_vm1, %v3068_v62  ;;  %2552 = vmatmul.mubr.msk.f32.gmra.mxu1 %vm163_vm1, %v3068_v62 }
  0xfe   :  { %1437 = vmatprep.mubr.f32.mxu0 %v4489_v20  ;;  %1598 = vmatprep.mubr.f32.mxu1 %v4489_v20 }
  0xff   :  { %v3582_v54 = vpop.f32.mrf.mxu0  ;;  %v3584_v55 = vpop.f32.mrf.mxu1 }
 0x101   :  { %v3586_v18 = vpop.f32.mrf.mxu0  ;;  %v3588_v58 = vpop.f32.mrf.mxu1  ;;  %2537 = vmatmul.mubr.msk.f32.gmra.mxu0 %vm163_vm1, %v3087_v6  ;;  %2553 = vmatmul.mubr.msk.f32.gmra.mxu1 %vm163_vm1, %v3087_v6 }
 0x102   :  { %1443 = vmatprep.mubr.f32.mxu0 %v4489_v20  ;;  %1604 = vmatprep.mubr.f32.mxu1 %v4489_v20 }
 0x103   :  { %v3596_v62 = vpop.f32.mrf.mxu0  ;;  %v3598_v59 = vpop.f32.mrf.mxu1 }
 0x105   :  { %v3600_v60 = vpop.f32.mrf.mxu0  ;;  %v3602_v23 = vpop.f32.mrf.mxu1  ;;  %2538 = vmatmul.mubr.msk.f32.gmra.mxu0 %vm163_vm1, %v3105_v11  ;;  %2554 = vmatmul.mubr.msk.f32.gmra.mxu1 %vm163_vm1, %v3105_v11 }
 0x106   :  { %1449 = vmatprep.mubr.f32.mxu0 %v4489_v20  ;;  %1610 = vmatprep.mubr.f32.mxu1 %v4489_v20 }
 0x107   :  { %v3610_v6 = vpop.f32.mrf.mxu0  ;;  %v3612_v61 = vpop.f32.mrf.mxu1 }
 0x109   :  { %v3614_v63 = vpop.f32.mrf.mxu0  ;;  %v3616_v1 = vpop.f32.mrf.mxu1  ;;  %2539 = vmatmul.mubr.msk.f32.gmra.mxu0 %vm163_vm1, %v3120_v14  ;;  %2555 = vmatmul.mubr.msk.f32.gmra.mxu1 %vm163_vm1, %v3120_v14 }
 0x10a   :  { %1455 = vmatprep.mubr.f32.mxu0 %v4489_v20  ;;  %1616 = vmatprep.mubr.f32.mxu1 %v4489_v20 }
 0x10b   :  { %v3624_v11 = vpop.f32.mrf.mxu0  ;;  %v3626_v30 = vpop.f32.mrf.mxu1 }
 0x10d   :  { %v3628_v36 = vpop.f32.mrf.mxu0  ;;  %v3630_v43 = vpop.f32.mrf.mxu1  ;;  %2540 = vmatmul.mubr.msk.f32.gmra.mxu0 %vm163_vm1, %v3135_v19  ;;  %2556 = vmatmul.mubr.msk.f32.gmra.mxu1 %vm163_vm1, %v3135_v19 }
 0x10e   :  { %1461 = vmatprep.mubr.f32.mxu0 %v4489_v20  ;;  %1622 = vmatprep.mubr.f32.mxu1 %v4489_v20 }
 0x10f   :  { %v3638_v14 = vpop.f32.mrf.mxu0  ;;  %v3640_v2 = vpop.f32.mrf.mxu1 }
 0x110   :  { %4495 = vst [vmem:[#allocation9_spill] sm:$0xff] %v3638_v14  ;;  %4496 = vst [vmem:[#allocation10_spill] sm:$0xff] %v3640_v2 }
 0x111   :  { %v3642_v39 = vpop.f32.mrf.mxu0  ;;  %v3644_v5 = vpop.f32.mrf.mxu1  ;;  %2541 = vmatmul.mubr.msk.f32.gmra.mxu0 %vm163_vm1, %v3145_v25  ;;  %2557 = vmatmul.mubr.msk.f32.gmra.mxu1 %vm163_vm1, %v3145_v25 }
 0x112   :  { %4497 = vst [vmem:[#allocation11_spill] sm:$0xff] %v3642_v39  ;;  %4498 = vst [vmem:[#allocation12_spill] sm:$0xff] %v3644_v5  ;;  %1467 = vmatprep.mubr.f32.mxu0 %v4489_v20  ;;  %1628 = vmatprep.mubr.f32.mxu1 %v4489_v20 }
 0x113   :  { %v3652_v19 = vpop.f32.mrf.mxu0  ;;  %v3654_v56 = vpop.f32.mrf.mxu1 }
 0x114   :  { %4499 = vst [vmem:[#allocation13_spill] sm:$0xff] %v3652_v19  ;;  %4500 = vst [vmem:[#allocation14_spill] sm:$0xff] %v3654_v56 }
 0x115   :  { %v3656_v7 = vpop.f32.mrf.mxu0  ;;  %v3658_v50 = vpop.f32.mrf.mxu1  ;;  %2542 = vmatmul.mubr.msk.f32.gmra.mxu0 %vm163_vm1, %v3538_v21  ;;  %2558 = vmatmul.mubr.msk.f32.gmra.mxu1 %vm163_vm1, %v3538_v21 }
 0x116   :  { %4501 = vst [vmem:[#allocation15_spill] sm:$0xff] %v3656_v7  ;;  %4502 = vst [vmem:[#allocation16_spill] sm:$0xff] %v3658_v50 }
 0x117   :  { %v3664_v24 = vpop.f32.mrf.mxu0  ;;  %v3666_v25 = vpop.f32.mrf.mxu1 }
 0x118   :  { %4503 = vst [vmem:[#allocation17_spill] sm:$0xff] %v3664_v24  ;;  %4504 = vst [vmem:[#allocation18_spill] sm:$0xff] %v3666_v25 }
 0x119   :  { %v632_v5 = vpop.f32.mrf.mxu0  ;;  %v793_v20 = vpop.f32.mrf.mxu1 }
 0x11a   :  { %v3669_v19 = vadd.f32 %v632_v5, %v3442_v48  ;;  %v3672_v56 = vadd.f32 %v793_v20, %v3444_v57 }
 0x11b   :  { %v634_v7 = vpop.f32.mrf.mxu0  ;;  %v795_v50 = vpop.f32.mrf.mxu1 }
 0x11c   :  { %v3675_v39 = vadd.f32 %v634_v7, %v3452_v0  ;;  %v3678_v2 = vadd.f32 %v795_v50, %v3454_v3 }
 0x11d   :  { %v638_v21 = vpop.f32.mrf.mxu0  ;;  %v799_v24 = vpop.f32.mrf.mxu1 }
 0x11e   :  { %v3681_v25 = vadd.f32 %v638_v21, %v3456_v4  ;;  %v3684_v14 = vadd.f32 %v799_v24, %v3458_v8 }
 0x11f   :  { %v640_v48 = vpop.f32.mrf.mxu0  ;;  %v801_v5 = vpop.f32.mrf.mxu1 }
 0x120   :  { %v3687_v20 = vadd.f32 %v640_v48, %v3466_v27  ;;  %v3690_v57 = vadd.f32 %v801_v5, %v3468_v9 }
 0x121   :  { %v644_v7 = vpop.f32.mrf.mxu0  ;;  %v805_v0 = vpop.f32.mrf.mxu1 }
 0x122   :  { %v3693_v3 = vadd.f32 %v644_v7, %v3470_v10  ;;  %v3696_v50 = vadd.f32 %v805_v0, %v3472_v12 }
 0x123   :  { %v646_v4 = vpop.f32.mrf.mxu0  ;;  %v807_v21 = vpop.f32.mrf.mxu1 }
 0x124   :  { %v3699_v8 = vadd.f32 %v646_v4, %v3480_v34  ;;  %v3702_v24 = vadd.f32 %v807_v21, %v3482_v13 }
 0x125   :  { %v650_v27 = vpop.f32.mrf.mxu0  ;;  %v811_v48 = vpop.f32.mrf.mxu1 }
 0x126   :  { %v3705_v9 = vadd.f32 %v650_v27, %v3484_v16  ;;  %v3708_v5 = vadd.f32 %v811_v48, %v3486_v17 }
 0x127   :  { %v652_v10 = vpop.f32.mrf.mxu0  ;;  %v813_v7 = vpop.f32.mrf.mxu1 }
 0x128   :  { %v3711_v12 = vadd.f32 %v652_v10, %v3494_v41  ;;  %v3714_v0 = vadd.f32 %v813_v7, %v3496_v22 }
 0x129   :  { %v656_v34 = vpop.f32.mrf.mxu0  ;;  %v817_v4 = vpop.f32.mrf.mxu1 }
 0x12a   :  { %v3717_v13 = vadd.f32 %v656_v34, %v3498_v26  ;;  %v3720_v21 = vadd.f32 %v817_v4, %v3500_v28 }
 0x12b   :  { %v658_v16 = vpop.f32.mrf.mxu0  ;;  %v819_v27 = vpop.f32.mrf.mxu1 }
 0x12c   :  { %v3723_v17 = vadd.f32 %v658_v16, %v3508_v53  ;;  %v3726_v48 = vadd.f32 %v819_v27, %v3510_v29 }
 0x12d   :  { %v662_v41 = vpop.f32.mrf.mxu0  ;;  %v823_v10 = vpop.f32.mrf.mxu1 }
 0x12e   :  { %v3729_v22 = vadd.f32 %v662_v41, %v3512_v31  ;;  %v3732_v7 = vadd.f32 %v823_v10, %v3514_v32 }
 0x12f   :  { %v664_v26 = vpop.f32.mrf.mxu0  ;;  %v825_v34 = vpop.f32.mrf.mxu1 }
 0x130   :  { %v3735_v28 = vadd.f32 %v664_v26, %v3523_v15  ;;  %v3738_v4 = vadd.f32 %v825_v34, %v3525_v33 }
 0x131   :  { %v668_v53 = vpop.f32.mrf.mxu0  ;;  %v829_v16 = vpop.f32.mrf.mxu1 }
 0x132   :  { %v3741_v29 = vadd.f32 %v668_v53, %v3527_v35  ;;  %v3744_v27 = vadd.f32 %v829_v16, %v3529_v38 }
 0x133   :  { %v670_v31 = vpop.f32.mrf.mxu0  ;;  %v831_v41 = vpop.f32.mrf.mxu1 }
 0x134   :  { %v3747_v32 = vadd.f32 %v670_v31, %v3540_v40  ;;  %v3750_v10 = vadd.f32 %v831_v41, %v3542_v42 }
 0x135   :  { %v674_v15 = vpop.f32.mrf.mxu0  ;;  %v835_v26 = vpop.f32.mrf.mxu1 }
 0x136   :  { %v3753_v33 = vadd.f32 %v674_v15, %v3544_v44  ;;  %v3756_v34 = vadd.f32 %v835_v26, %v3546_v45 }
 0x137   :  { %v676_v35 = vpop.f32.mrf.mxu0  ;;  %v837_v53 = vpop.f32.mrf.mxu1 }
 0x138   :  { %v3759_v38 = vadd.f32 %v676_v35, %v3554_v37  ;;  %v3762_v16 = vadd.f32 %v837_v53, %v3556_v46 }
 0x139   :  { %v680_v40 = vpop.f32.mrf.mxu0  ;;  %v841_v31 = vpop.f32.mrf.mxu1 }
 0x13a   :  { %v3765_v42 = vadd.f32 %v680_v40, %v3558_v47  ;;  %v3768_v41 = vadd.f32 %v841_v31, %v3560_v49 }
 0x13b   :  { %v3770_v44 = vpop.f32.mrf.mxu0  ;;  %v3772_v45 = vpop.f32.mrf.mxu1 }
 0x13c   :  { %4505 = vst [vmem:[#allocation19_spill] sm:$0xff] %v3765_v42  ;;  %4506 = vst [vmem:[#allocation20_spill] sm:$0xff] %v3768_v41 }
 0x13d   :  { %v686_v15 = vpop.f32.mrf.mxu0  ;;  %v847_v26 = vpop.f32.mrf.mxu1 }
 0x13e   :  { %v3775_v37 = vadd.f32 %v686_v15, %v3572_v51  ;;  %v3778_v46 = vadd.f32 %v847_v26, %v3574_v52 }
 0x13f   :  { %v688_v35 = vpop.f32.mrf.mxu0  ;;  %v849_v53 = vpop.f32.mrf.mxu1 }
 0x140   :  { %v3781_v47 = vadd.f32 %v688_v35, %v3582_v54  ;;  %v3784_v49 = vadd.f32 %v849_v53, %v3584_v55 }
 0x141   :  { %v692_v40 = vpop.f32.mrf.mxu0  ;;  %v853_v31 = vpop.f32.mrf.mxu1 }
 0x142   :  { %v3787_v41 = vadd.f32 %v692_v40, %v3586_v18  ;;  %v3790_v42 = vadd.f32 %v853_v31, %v3588_v58 }
 0x143   :  { %v694_v51 = vpop.f32.mrf.mxu0  ;;  %v855_v15 = vpop.f32.mrf.mxu1 }
 0x144   :  { %v3793_v52 = vadd.f32 %v694_v51, %v3596_v62  ;;  %v3796_v26 = vadd.f32 %v855_v15, %v3598_v59 }
 0x145   :  { %v698_v54 = vpop.f32.mrf.mxu0  ;;  %v859_v35 = vpop.f32.mrf.mxu1 }
 0x146   :  { %v3799_v55 = vadd.f32 %v698_v54, %v3600_v60  ;;  %v3802_v53 = vadd.f32 %v859_v35, %v3602_v23 }
 0x147   :  { %v700_v18 = vpop.f32.mrf.mxu0  ;;  %v861_v40 = vpop.f32.mrf.mxu1 }
 0x148   :  { %v3805_v58 = vadd.f32 %v700_v18, %v3610_v6  ;;  %v3808_v31 = vadd.f32 %v861_v40, %v3612_v61 }
 0x149   :  { %v704_v62 = vpop.f32.mrf.mxu0  ;;  %v865_v51 = vpop.f32.mrf.mxu1 }
 0x14a   :  { %v3811_v59 = vadd.f32 %v704_v62, %v3614_v63  ;;  %v3814_v15 = vadd.f32 %v865_v51, %v3616_v1  ;;  %v4513_v1 = vld [vmem:[#allocation9_spill] sm:$0xff] }
 0x14b   :  { %v706_v60 = vpop.f32.mrf.mxu0  ;;  %v867_v54 = vpop.f32.mrf.mxu1 }
 0x14c   :  { %4507 = vst [vmem:[#allocation21_spill] sm:$0xff] %v3811_v59  ;;  %4508 = vst [vmem:[#allocation22_spill] sm:$0xff] %v3814_v15  ;;  %v3817_v23 = vadd.f32 %v706_v60, %v3624_v11  ;;  %v3820_v35 = vadd.f32 %v867_v54, %v3626_v30  ;;  %v4515_v15 = vld [vmem:[#allocation10_spill] sm:$0xff]  ;;  %v4517_v30 = vld [vmem:[#allocation11_spill] sm:$0xff] }
 0x14d   :  { %v710_v6 = vpop.f32.mrf.mxu0  ;;  %v871_v18 = vpop.f32.mrf.mxu1 }
 0x14e   :  { %4509 = vst [vmem:[#allocation23_spill] sm:$0xff] %v3817_v23  ;;  %4510 = vst [vmem:[#allocation24_spill] sm:$0xff] %v3820_v35  ;;  %v3823_v61 = vadd.f32 %v710_v6, %v3628_v36  ;;  %v3826_v40 = vadd.f32 %v871_v18, %v3630_v43  ;;  %v4519_v35 = vld [vmem:[#allocation12_spill] sm:$0xff]  ;;  %v4521_v43 = vld [vmem:[#allocation13_spill] sm:$0xff] }
 0x14f   :  { %v712_v63 = vpop.f32.mrf.mxu0  ;;  %v873_v62 = vpop.f32.mrf.mxu1 }
 0x150   :  { %4511 = vst [vmem:[#allocation25_spill] sm:$0xff] %v3823_v61  ;;  %4512 = vst [vmem:[#allocation26_spill] sm:$0xff] %v3826_v40  ;;  %v3829_v51 = vadd.f32 %v712_v63, %v4513_v1  ;;  %v3832_v59 = vadd.f32 %v873_v62, %v4515_v15  ;;  %v4522_v40 = vld [vmem:[#allocation14_spill] sm:$0xff]  ;;  %v4523_v15 = vld [vmem:[#allocation15_spill] sm:$0xff] }
 0x151   :  { %v716_v11 = vpop.f32.mrf.mxu0  ;;  %v877_v60 = vpop.f32.mrf.mxu1 }
 0x152   :  { %4514 = vst [vmem:[#allocation9_spill] sm:$0xff] %v3829_v51  ;;  %4516 = vst [vmem:[#allocation10_spill] sm:$0xff] %v3832_v59  ;;  %v3835_v54 = vadd.f32 %v716_v11, %v4517_v30  ;;  %v3838_v23 = vadd.f32 %v877_v60, %v4519_v35  ;;  %v4524_v59 = vld [vmem:[#allocation16_spill] sm:$0xff]  ;;  %v4525_v35 = vld [vmem:[#allocation17_spill] sm:$0xff] }
 0x153   :  { %v718_v36 = vpop.f32.mrf.mxu0  ;;  %v879_v6 = vpop.f32.mrf.mxu1 }
 0x154   :  { %4518 = vst [vmem:[#allocation11_spill] sm:$0xff] %v3835_v54  ;;  %4520 = vst [vmem:[#allocation12_spill] sm:$0xff] %v3838_v23  ;;  %v3841_v18 = vadd.f32 %v718_v36, %v4521_v43  ;;  %v3844_v61 = vadd.f32 %v879_v6, %v4522_v40  ;;  %v4526_v23 = vld [vmem:[#allocation18_spill] sm:$0xff] }
 0x155   :  { %v722_v63 = vpop.f32.mrf.mxu0  ;;  %v883_v1 = vpop.f32.mrf.mxu1 }
 0x156   :  { %v3847_v62 = vadd.f32 %v722_v63, %v4523_v15  ;;  %v3850_v51 = vadd.f32 %v883_v1, %v4524_v59  ;;  %v2195_v59 = vld [vmem:[%s4482_s5 + $0x78] sm:$0xff] }
 0x157   :  { %v724_v11 = vpop.f32.mrf.mxu0  ;;  %v885_v30 = vpop.f32.mrf.mxu1  ;;  %2636 = vmatpush3.msra.mxu0 %v2195_v59 }
 0x158   :  { %v3853_v60 = vadd.f32 %v724_v11, %v4525_v35  ;;  %v3856_v54 = vadd.f32 %v885_v30, %v4526_v23 }
 0x159   :  { %v973_v36 = vpop.f32.mrf.mxu0  ;;  %v1134_v43 = vpop.f32.mrf.mxu1 }
 0x15a   :  { %4527 = vst [vmem:[#allocation13_spill] sm:$0xff] %v3856_v54  ;;  %v3859_v40 = vadd.f32 %v973_v36, %v3669_v19  ;;  %v3862_v6 = vadd.f32 %v1134_v43, %v3672_v56  ;;  %v4528_v19 = vmov 0.0   ;;  %v2194_v36 = vld [vmem:[%s4482_s5 + $0x70] sm:$0xff] }
 0x15b   :  { %v975_v63 = vpop.f32.mrf.mxu0  ;;  %v1136_v15 = vpop.f32.mrf.mxu1  ;;  %2637 = vmatprep.subr.mxu0 %v4528_v19  ;;  %2667 = vmatprep.mubr.msk.f32.mxu0 %vm2732_vm3, %v4528_v19 }
 0x15c   :  { %v3868_v1 = vadd.f32 %v975_v63, %v3675_v39  ;;  %v3871_v23 = vadd.f32 %v1136_v15, %v3678_v2  ;;  %2638 = vmatpush3.msra.mxu0 %v2194_v36  ;;  %2702 = vmatprep.mubr.msk.f32.mxu1 %vm2732_vm3, %v4528_v19 }
 0x15d   :  { %v979_v11 = vpop.f32.mrf.mxu0  ;;  %v1140_v30 = vpop.f32.mrf.mxu1  ;;  %2639 = vmatprep.subr.mxu0 %v4528_v19 }
 0x15e   :  { %v3875_v56 = vadd.f32 %v979_v11, %v3681_v25  ;;  %v3878_v35 = vadd.f32 %v1140_v30, %v3684_v14 }
 0x15f   :  { %v981_v39 = vpop.f32.mrf.mxu0  ;;  %v1142_v43 = vpop.f32.mrf.mxu1 }
 0x160   :  { %v3884_v2 = vadd.f32 %v981_v39, %v3687_v20  ;;  %v3887_v63 = vadd.f32 %v1142_v43, %v3690_v57  ;;  %v2193_v43 = vld [vmem:[%s4482_s5 + $0x68] sm:$0xff] }
 0x161   :  { %v985_v25 = vpop.f32.mrf.mxu0  ;;  %v1146_v15 = vpop.f32.mrf.mxu1  ;;  %2640 = vmatpush3.msra.mxu0 %v2193_v43 }
 0x162   :  { %v3891_v14 = vadd.f32 %v985_v25, %v3693_v3  ;;  %v3894_v59 = vadd.f32 %v1146_v15, %v3696_v50  ;;  %2641 = vmatprep.subr.mxu0 %v4528_v19 }
 0x163   :  { %v987_v11 = vpop.f32.mrf.mxu0  ;;  %v1148_v30 = vpop.f32.mrf.mxu1 }
 0x164   :  { %v3897_v36 = vadd.f32 %v987_v11, %v3699_v8  ;;  %v3900_v20 = vadd.f32 %v1148_v30, %v3702_v24 }
 0x165   :  { %v991_v57 = vpop.f32.mrf.mxu0  ;;  %v1152_v39 = vpop.f32.mrf.mxu1 }
 0x166   :  { %v3906_v3 = vadd.f32 %v991_v57, %v3705_v9  ;;  %v3909_v50 = vadd.f32 %v1152_v39, %v3708_v5  ;;  %v2192_v39 = vld [vmem:[%s4482_s5 + $0x60] sm:$0xff] }
 0x167   :  { %v993_v25 = vpop.f32.mrf.mxu0  ;;  %v1154_v15 = vpop.f32.mrf.mxu1  ;;  %2642 = vmatpush3.msra.mxu0 %v2192_v39 }
 0x168   :  { %v3913_v8 = vadd.f32 %v993_v25, %v3711_v12  ;;  %v3916_v24 = vadd.f32 %v1154_v15, %v3714_v0  ;;  %2643 = vmatprep.subr.mxu0 %v4528_v19 }
 0x169   :  { %v997_v11 = vpop.f32.mrf.mxu0  ;;  %v1158_v30 = vpop.f32.mrf.mxu1 }
 0x16a   :  { %v3919_v54 = vadd.f32 %v997_v11, %v3717_v13  ;;  %v3922_v9 = vadd.f32 %v1158_v30, %v3720_v21 }
 0x16b   :  { %v999_v5 = vpop.f32.mrf.mxu0  ;;  %v1160_v57 = vpop.f32.mrf.mxu1 }
 0x16c   :  { %v3928_v12 = vadd.f32 %v999_v5, %v3723_v17  ;;  %v3931_v0 = vadd.f32 %v1160_v57, %v3726_v48  ;;  %v2191_v48 = vld [vmem:[%s4482_s5 + $0x58] sm:$0xff] }
 0x16d   :  { %v1003_v43 = vpop.f32.mrf.mxu0  ;;  %v1164_v25 = vpop.f32.mrf.mxu1  ;;  %2644 = vmatpush3.msra.mxu0 %v2191_v48 }
 0x16e   :  { %v3935_v13 = vadd.f32 %v1003_v43, %v3729_v22  ;;  %v3938_v21 = vadd.f32 %v1164_v25, %v3732_v7  ;;  %2645 = vmatprep.subr.mxu0 %v4528_v19 }
 0x16f   :  { %v1005_v15 = vpop.f32.mrf.mxu0  ;;  %v1166_v11 = vpop.f32.mrf.mxu1 }
 0x170   :  { %v3941_v30 = vadd.f32 %v1005_v15, %v3735_v28  ;;  %v3944_v17 = vadd.f32 %v1166_v11, %v3738_v4 }
 0x171   :  { %v1009_v5 = vpop.f32.mrf.mxu0  ;;  %v1170_v57 = vpop.f32.mrf.mxu1 }
 0x172   :  { %v3950_v22 = vadd.f32 %v1009_v5, %v3741_v29  ;;  %v3953_v7 = vadd.f32 %v1170_v57, %v3744_v27 }
 0x173   :  { %v1011_v28 = vpop.f32.mrf.mxu0  ;;  %v1172_v39 = vpop.f32.mrf.mxu1 }
 0x174   :  { %v3957_v4 = vadd.f32 %v1011_v28, %v3747_v32  ;;  %v3960_v43 = vadd.f32 %v1172_v39, %v3750_v10  ;;  %v2190_v10 = vld [vmem:[%s4482_s5 + $0x50] sm:$0xff] }
 0x175   :  { %v1015_v25 = vpop.f32.mrf.mxu0  ;;  %v1176_v15 = vpop.f32.mrf.mxu1  ;;  %v4532_v39 = vld [vmem:[#allocation7_spill] sm:$0xff]  ;;  %2646 = vmatpush3.msra.mxu0 %v2190_v10 }
 0x176   :  { %v3963_v11 = vadd.f32 %v1015_v25, %v3753_v33  ;;  %v3966_v29 = vadd.f32 %v1176_v15, %v3756_v34  ;;  %v683_v33 = vadd.f32 %v3770_v44, %v4532_v39  ;;  %v4533_v25 = vld [vmem:[#allocation8_spill] sm:$0xff]  ;;  %v4534_v15 = vld [vmem:[#allocation19_spill] sm:$0xff]  ;;  %2647 = vmatprep.subr.mxu0 %v4528_v19 }
 0x177   :  { %v1017_v27 = vpop.f32.mrf.mxu0  ;;  %v1178_v48 = vpop.f32.mrf.mxu1  ;;  %v844_v34 = vadd.f32 %v3772_v45, %v4533_v25 }
 0x178   :  { %4529 = vst [vmem:[#allocation14_spill] sm:$0xff] %v3966_v29  ;;  %v3969_v5 = vadd.f32 %v1017_v27, %v3759_v38  ;;  %v3972_v57 = vadd.f32 %v1178_v48, %v3762_v16  ;;  %v4535_v38 = vld [vmem:[#allocation20_spill] sm:$0xff] }
 0x179   :  { %v1021_v32 = vpop.f32.mrf.mxu0  ;;  %v1182_v28 = vpop.f32.mrf.mxu1 }
 0x17a   :  { %4530 = vst [vmem:[#allocation15_spill] sm:$0xff] %v3969_v5  ;;  %4531 = vst [vmem:[#allocation16_spill] sm:$0xff] %v3972_v57  ;;  %v3982_v29 = vadd.f32 %v1021_v32, %v4534_v15  ;;  %v3985_v27 = vadd.f32 %v1182_v28, %v4535_v38  ;;  %v2189_v57 = vld [vmem:[%s4482_s5 + $0x48] sm:$0xff] }
 0x17b   :  { %v1023_v16 = vpop.f32.mrf.mxu0  ;;  %v1184_v48 = vpop.f32.mrf.mxu1  ;;  %2648 = vmatpush3.msra.mxu0 %v2189_v57 }
 0x17c   :  { %v3991_v5 = vadd.f32 %v1023_v16, %v683_v33  ;;  %v3993_v44 = vadd.f32 %v1184_v48, %v844_v34  ;;  %2649 = vmatprep.subr.mxu0 %v4528_v19 }
 0x17d   :  { %v1027_v45 = vpop.f32.mrf.mxu0  ;;  %v1188_v32 = vpop.f32.mrf.mxu1 }
 0x17e   :  { %v3997_v28 = vadd.f32 %v1027_v45, %v3775_v37  ;;  %v4000_v10 = vadd.f32 %v1188_v32, %v3778_v46 }
 0x17f   :  { %v1029_v39 = vpop.f32.mrf.mxu0  ;;  %v1190_v25 = vpop.f32.mrf.mxu1 }
 0x180   :  { %v4003_v15 = vadd.f32 %v1029_v39, %v3781_v47  ;;  %v4006_v33 = vadd.f32 %v1190_v25, %v3784_v49 }
 0x181   :  { %v1033_v34 = vpop.f32.mrf.mxu0  ;;  %v1194_v57 = vpop.f32.mrf.mxu1 }
 0x182   :  { %4536 = vst [vmem:[#allocation17_spill] sm:$0xff] %v4006_v33  ;;  %v4009_v38 = vadd.f32 %v1033_v34, %v3787_v41  ;;  %v4012_v16 = vadd.f32 %v1194_v57, %v3790_v42 }
 0x183   :  { %v1035_v37 = vpop.f32.mrf.mxu0  ;;  %v1196_v48 = vpop.f32.mrf.mxu1 }
 0x184   :  { %4537 = vst [vmem:[#allocation18_spill] sm:$0xff] %v4009_v38  ;;  %4538 = vst [vmem:[#allocation7_spill] sm:$0xff] %v4012_v16  ;;  %v4015_v46 = vadd.f32 %v1035_v37, %v3793_v52  ;;  %v4018_v45 = vadd.f32 %v1196_v48, %v3796_v26  ;;  %v4545_v26 = vld [vmem:[#allocation21_spill] sm:$0xff]  ;;  %v4547_v48 = vld [vmem:[#allocation22_spill] sm:$0xff] }
 0x185   :  { %v1039_v47 = vpop.f32.mrf.mxu0  ;;  %v1200_v32 = vpop.f32.mrf.mxu1 }
 0x186   :  { %4539 = vst [vmem:[#allocation8_spill] sm:$0xff] %v4015_v46  ;;  %4540 = vst [vmem:[#allocation19_spill] sm:$0xff] %v4018_v45  ;;  %v4021_v49 = vadd.f32 %v1039_v47, %v3799_v55  ;;  %v4024_v39 = vadd.f32 %v1200_v32, %v3802_v53  ;;  %v4549_v53 = vld [vmem:[#allocation23_spill] sm:$0xff] }
 0x187   :  { %v1041_v41 = vpop.f32.mrf.mxu0  ;;  %v1202_v25 = vpop.f32.mrf.mxu1 }
 0x188   :  { %4541 = vst [vmem:[#allocation20_spill] sm:$0xff] %v4021_v49  ;;  %4542 = vst [vmem:[#allocation27_spill] sm:$0xff] %v4024_v39  ;;  %v4027_v42 = vadd.f32 %v1041_v41, %v3805_v58  ;;  %v4030_v34 = vadd.f32 %v1202_v25, %v3808_v31  ;;  %v4551_v39 = vld [vmem:[#allocation24_spill] sm:$0xff]  ;;  %v1701_v58 = vlaneseq  ;;  %v2188_v25 = vld [vmem:[%s4482_s5 + $0x40] sm:$0xff] }
 0x189   :  { %v1045_v52 = vpop.f32.mrf.mxu0  ;;  %v1206_v57 = vpop.f32.mrf.mxu1  ;;  %2650 = vmatpush3.msra.mxu0 %v2188_v25  ;;  %v2186_v25 = vld [vmem:[%s4482_s5 + $0x30] sm:$0xff] }
 0x18a   :  { %4543 = vst [vmem:[#allocation28_spill] sm:$0xff] %v4027_v42  ;;  %4544 = vst [vmem:[#allocation29_spill] sm:$0xff] %v4030_v34  ;;  %v4033_v37 = vadd.f32 %v1045_v52, %v4545_v26  ;;  %v4036_v45 = vadd.f32 %v1206_v57, %v4547_v48  ;;  %v4553_v52 = vld [vmem:[#allocation25_spill] sm:$0xff]  ;;  %v4555_v57 = vld [vmem:[#allocation26_spill] sm:$0xff]  ;;  %2651 = vmatprep.subr.mxu0 %v4528_v19 }
 0x18b   :  { %v1047_v55 = vpop.f32.mrf.mxu0  ;;  %v1208_v47 = vpop.f32.mrf.mxu1  ;;  %v2180_v34 = vld [vmem:[%s4482_s5] sm:$0xff] }
 0x18c   :  { %4546 = vst [vmem:[#allocation21_spill] sm:$0xff] %v4033_v37  ;;  %4548 = vst [vmem:[#allocation22_spill] sm:$0xff] %v4036_v45  ;;  %v4039_v32 = vadd.f32 %v1047_v55, %v4549_v53  ;;  %v4042_v49 = vadd.f32 %v1208_v47, %v4551_v39  ;;  %v2187_v39 = vld [vmem:[%s4482_s5 + $0x38] sm:$0xff]  ;;  %v4557_v47 = vld [vmem:[#allocation9_spill] sm:$0xff] }
 0x18d   :  { %v1051_v41 = vpop.f32.mrf.mxu0  ;;  %v1212_v31 = vpop.f32.mrf.mxu1  ;;  %2652 = vmatpush3.msra.mxu0 %v2187_v39  ;;  %v2184_v39 = vld [vmem:[%s4482_s5 + $0x20] sm:$0xff] }
 0x18e   :  { %4550 = vst [vmem:[#allocation23_spill] sm:$0xff] %v4039_v32  ;;  %4552 = vst [vmem:[#allocation24_spill] sm:$0xff] %v4042_v49  ;;  %v4048_v26 = vadd.f32 %v1051_v41, %v4553_v52  ;;  %v4051_v48 = vadd.f32 %v1212_v31, %v4555_v57  ;;  %v4559_v49 = vld [vmem:[#allocation10_spill] sm:$0xff]  ;;  %v1702_v41 = vshrl.u32 %v1701_v58, 7  ;;  %2653 = vmatprep.subr.mxu0 %v4528_v19 }
 0x18f   :  { %v1053_v45 = vpop.f32.mrf.mxu0  ;;  %v1214_v55 = vpop.f32.mrf.mxu1  ;;  %v2185_v57 = vld [vmem:[%s4482_s5 + $0x28] sm:$0xff]  ;;  %2654 = vmatpush3.msra.mxu0 %v2186_v25 }
 0x190   :  { %4554 = vst [vmem:[#allocation25_spill] sm:$0xff] %v4048_v26  ;;  %4556 = vst [vmem:[#allocation26_spill] sm:$0xff] %v4051_v48  ;;  %v4058_v53 = vadd.f32 %v1053_v45, %v4557_v47  ;;  %v4061_v32 = vadd.f32 %v1214_v55, %v4559_v49  ;;  %v4561_v48 = vld [vmem:[#allocation11_spill] sm:$0xff]  ;;  %v4563_v47 = vld [vmem:[#allocation12_spill] sm:$0xff]  ;;  %2655 = vmatprep.subr.mxu0 %v4528_v19  ;;  %v1711_v25 = vsub.s32 2, %v1702_v41  ;;  %v4117_v26 = vstv %s4077_s27 }
 0x191   :  { %v1057_v52 = vpop.f32.mrf.mxu0  ;;  %v1218_v31 = vpop.f32.mrf.mxu1  ;;  %2656 = vmatpush3.msra.mxu0 %v2185_v57  ;;  %v1707_v57 = vsub.s32 1, %v1702_v41 }
 0x192   :  { %4558 = vst [vmem:[#allocation9_spill] sm:$0xff] %v4058_v53  ;;  %4560 = vst [vmem:[#allocation10_spill] sm:$0xff] %v4061_v32  ;;  %v4071_v45 = vadd.f32 %v1057_v52, %v4561_v48  ;;  %v4074_v49 = vadd.f32 %v1218_v31, %v4563_v47  ;;  %v1703_v31 = vsub.s32 0, %v1702_v41  ;;  %2657 = vmatprep.subr.mxu0 %v4528_v19  ;;  %v2183_v32 = vld [vmem:[%s4482_s5 + $0x18] sm:$0xff] }
 0x193   :  { %v1059_v58 = vpop.f32.mrf.mxu0  ;;  %v1220_v55 = vpop.f32.mrf.mxu1  ;;  %2658 = vmatpush3.msra.mxu0 %v2184_v39  ;;  %v2181_v39 = vld [vmem:[%s4482_s5 + $0x8] sm:$0xff] }
 0x194   :  { %4562 = vst [vmem:[#allocation11_spill] sm:$0xff] %v4071_v45  ;;  %4564 = vst [vmem:[#allocation12_spill] sm:$0xff] %v4074_v49  ;;  %v4085_v48 = vadd.f32 %v1059_v58, %v3841_v18  ;;  %v4088_v52 = vadd.f32 %v1220_v55, %v3844_v61  ;;  %v1699_v45 = vld [vmem:[%s4481_s4] sm:$0xf]  ;;  %v1715_v55 = vsub.s32 3, %v1702_v41  ;;  %2659 = vmatprep.subr.mxu0 %v4528_v19 }
 0x195   :  { %v1063_v47 = vpop.f32.mrf.mxu0  ;;  %v1224_v49 = vpop.f32.mrf.mxu1  ;;  %v4108_v53 = vrot.slane %v1699_v45, %v1711_v25  ;;  %2660 = vmatpush3.msra.mxu0 %v2183_v32  ;;  %v4119_v37 = vrot.slane %v1699_v45, %v1707_v57 }
 0x196   :  { %4565 = vst [vmem:[#allocation30_spill] sm:$0xff] %v4085_v48  ;;  %4566 = vst [vmem:[#allocation31_spill] sm:$0xff] %v4088_v52  ;;  %v4098_v18 = vadd.f32 %v1063_v47, %v3847_v62  ;;  %v2182_v52 = vld [vmem:[%s4482_s5 + $0x10] sm:$0xff]  ;;  %v4106_v48 = vrot.slane %v1699_v45, %v1703_v31  ;;  %2661 = vmatprep.subr.mxu0 %v4528_v19  ;;  %v4121_v32 = vrot.slane %v1699_v45, %v1715_v55 }
 0x197   :  { %v1065_v61 = vpop.f32.mrf.mxu0  ;;  %v4100_v58 = vpop.f32.mrf.mxu1  ;;  %2662 = vmatpush3.msra.mxu0 %v2182_v52  ;;  %v4132_v57 = vadd.f32 %v1224_v49, %v3850_v51  ;;  %v2296_v51 = vld [vmem:[%s4484_s7 + $0x70] sm:$0xff] }
 0x198   :  { %4567 = vst [vmem:[#allocation32_spill] sm:$0xff] %v4098_v18  ;;  %2663 = vmatprep.subr.mxu0 %v4528_v19  ;;  %v4135_v45 = vadd.f32 %v1065_v61, %v3853_v60 }
 0x199   :  { %v1379_v62 = vpop.f32.mrf.mxu0  ;;  %v1540_v47 = vpop.f32.mrf.mxu1  ;;  %2664 = vmatpush3.msra.mxu0 %v2181_v39  ;;  %4568 = vst [vmem:[#allocation33_spill] sm:$0xff] %v4132_v57 }
 0x19a   :  { %v1635_v41 = vadd.f32 %v1379_v62, %v3859_v40  ;;  %v1637_v18 = vadd.f32 %v1540_v47, %v3862_v6  ;;  %4569 = vst [vmem:[#allocation34_spill] sm:$0xff] %v4135_v45  ;;  %2665 = vmatprep.subr.mxu0 %v4528_v19 }
 0x19b   :  { %v1381_v31 = vpop.f32.mrf.mxu0  ;;  %v1542_v25 = vpop.f32.mrf.mxu1  ;;  %2666 = vmatpush3.msra.mxu0 %v2180_v34 }
 0x19c   :  { %v1721_v42 = vadd.f32 %v4106_v48, %v1635_v41  ;;  %v1723_v40 = vadd.f32 %v4108_v53, %v1637_v18  ;;  %v1636_v6 = vadd.f32 %v1381_v31, %v3868_v1  ;;  %v1638_v52 = vadd.f32 %v1542_v25, %v3871_v23  ;;  %v2297_v1 = vld [vmem:[%s4484_s7 + $0x78] sm:$0xff] }
 0x19d   :  { %v1385_v55 = vpop.f32.mrf.mxu0  ;;  %v1546_v62 = vpop.f32.mrf.mxu1  ;;  %2671 = vmatpush3.msra.mxu1 %v2297_v1 }
 0x19e   :  { %vm1786_vm4 = vcmp.ge.f32.partialorder %v1721_v42, 0.0  ;;  %v1851_v47 = vmul.f32 %v4117_v26, %v1721_v42  ;;  %vm1788_vm5 = vcmp.ge.f32.partialorder %v1723_v40, 0.0  ;;  %v1853_v18 = vmul.f32 %v4117_v26, %v1723_v40  ;;  %2672 = vmatprep.subr.mxu1 %v4528_v19 }
 0x19f   :  { %v1722_v60 = vadd.f32 %v4119_v37, %v1636_v6  ;;  %v1724_v23 = vadd.f32 %v4121_v32, %v1638_v52  ;;  %v1639_v49 = vadd.f32 %v1385_v55, %v3875_v56  ;;  %v1641_v61 = vadd.f32 %v1546_v62, %v3878_v35  ;;  %v1387_v39 = vpop.f32.mrf.mxu0  ;;  %v1548_v41 = vpop.f32.mrf.mxu1  ;;  %v2295_v6 = vld [vmem:[%s4484_s7 + $0x68] sm:$0xff]  ;;  %2673 = vmatpush3.msra.mxu1 %v2296_v51  ;;  %v2294_v62 = vld [vmem:[%s4484_s7 + $0x60] sm:$0xff] }
 0x1a0   :  { %v1915_v34 = vsel %vm1786_vm4, %v1721_v42, %v1851_v47  ;;  %v1917_v31 = vsel %vm1788_vm5, %v1723_v40, %v1853_v18  ;;  %v1640_v25 = vadd.f32 %v1387_v39, %v3884_v2  ;;  %v1642_v45 = vadd.f32 %v1548_v41, %v3887_v63  ;;  %2674 = vmatprep.subr.mxu1 %v4528_v19 }
 0x1a1   :  { %vm1787_vm6 = vcmp.ge.f32.partialorder %v1722_v60, 0.0  ;;  %v1852_v56 = vmul.f32 %v4117_v26, %v1722_v60  ;;  %vm1789_vm7 = vcmp.ge.f32.partialorder %v1724_v23, 0.0  ;;  %v1854_v35 = vmul.f32 %v4117_v26, %v1724_v23  ;;  %v1391_v52 = vpop.f32.mrf.mxu0  ;;  %v1552_v55 = vpop.f32.mrf.mxu1  ;;  %2675 = vmatpush3.msra.mxu1 %v2295_v6 }
 0x1a2   :  { %v1725_v42 = vadd.f32 %v4106_v48, %v1639_v49  ;;  %v1727_v2 = vadd.f32 %v4108_v53, %v1641_v61  ;;  %v1726_v63 = vadd.f32 %v4119_v37, %v1640_v25  ;;  %v1728_v40 = vadd.f32 %v4121_v32, %v1642_v45  ;;  %2676 = vmatprep.subr.mxu1 %v4528_v19 }
 0x1a3   :  { %v1916_v47 = vsel %vm1787_vm6, %v1722_v60, %v1852_v56  ;;  %v1918_v18 = vsel %vm1789_vm7, %v1724_v23, %v1854_v35  ;;  %v1643_v1 = vadd.f32 %v1391_v52, %v3891_v14  ;;  %v1645_v51 = vadd.f32 %v1552_v55, %v3894_v59  ;;  %v1393_v39 = vpop.f32.mrf.mxu0  ;;  %v1554_v49 = vpop.f32.mrf.mxu1  ;;  %v2293_v60 = vld [vmem:[%s4484_s7 + $0x58] sm:$0xff]  ;;  %2677 = vmatpush3.msra.mxu1 %v2294_v62  ;;  %v2292_v52 = vld [vmem:[%s4484_s7 + $0x50] sm:$0xff] }
 0x1a4   :  { %vm1790_vm8 = vcmp.ge.f32.partialorder %v1725_v42, 0.0  ;;  %v1855_v61 = vmul.f32 %v4117_v26, %v1725_v42  ;;  %vm1792_vm9 = vcmp.ge.f32.partialorder %v1727_v2, 0.0  ;;  %v1857_v45 = vmul.f32 %v4117_v26, %v1727_v2  ;;  %2678 = vmatprep.subr.mxu1 %v4528_v19 }
 0x1a5   :  { %vm1791_vm10 = vcmp.ge.f32.partialorder %v1726_v63, 0.0  ;;  %v1856_v14 = vmul.f32 %v4117_v26, %v1726_v63  ;;  %vm1793_vm11 = vcmp.ge.f32.partialorder %v1728_v40, 0.0  ;;  %v1858_v59 = vmul.f32 %v4117_v26, %v1728_v40  ;;  %v1397_v23 = vpop.f32.mrf.mxu0  ;;  %v1558_v41 = vpop.f32.mrf.mxu1  ;;  %2679 = vmatpush3.msra.mxu1 %v2293_v60 }
 0x1a6   :  { %v1919_v25 = vsel %vm1790_vm8, %v1725_v42, %v1855_v61  ;;  %v1921_v6 = vsel %vm1792_vm9, %v1727_v2, %v1857_v45  ;;  %v1729_v56 = vadd.f32 %v4106_v48, %v1643_v1  ;;  %v1731_v35 = vadd.f32 %v4108_v53, %v1645_v51  ;;  %2680 = vmatprep.subr.mxu1 %v4528_v19  ;;  %v2291_v1 = vld [vmem:[%s4484_s7 + $0x48] sm:$0xff]  ;;  %v2290_v61 = vld [vmem:[%s4484_s7 + $0x40] sm:$0xff] }
 0x1a7   :  { %v1979_v55 = vadd.f32 %v1919_v25, %v1915_v34  ;;  %v2005_v57 = vadd.f32 %v1921_v6, %v1917_v31  ;;  %v1920_v46 = vsel %vm1791_vm10, %v1726_v63, %v1856_v14  ;;  %v1922_v16 = vsel %vm1793_vm11, %v1728_v40, %v1858_v59  ;;  %v1399_v38 = vpop.f32.mrf.mxu0  ;;  %v4182_v33 = vpop.f32.mrf.mxu1  ;;  %2681 = vmatpush3.msra.mxu1 %v2292_v52  ;;  %v2289_v14 = vld [vmem:[%s4484_s7 + $0x38] sm:$0xff] }
 0x1a8   :  { %v1992_v42 = vadd.f32 %v1920_v46, %v1916_v47  ;;  %v2018_v2 = vadd.f32 %v1922_v16, %v1918_v18  ;;  %vm1794_vm12 = vcmp.ge.f32.partialorder %v1729_v56, 0.0  ;;  %v1859_v62 = vmul.f32 %v4117_v26, %v1729_v56  ;;  %2682 = vmatprep.subr.mxu1 %v4528_v19 }
 0x1a9   :  { %vm1796_vm13 = vcmp.ge.f32.partialorder %v1731_v35, 0.0  ;;  %v1861_v34 = vmul.f32 %v4117_v26, %v1731_v35  ;;  %v1644_v31 = vadd.f32 %v1393_v39, %v3897_v36  ;;  %v1646_v63 = vadd.f32 %v1554_v49, %v3900_v20  ;;  %v1403_v40 = vpop.f32.mrf.mxu0  ;;  %v1564_v51 = vpop.f32.mrf.mxu1  ;;  %2683 = vmatpush3.msra.mxu1 %v2291_v1 }
 0x1aa   :  { %v1923_v16 = vsel %vm1794_vm12, %v1729_v56, %v1859_v62  ;;  %v1647_v46 = vadd.f32 %v1397_v23, %v3906_v3  ;;  %v1649_v47 = vadd.f32 %v1558_v41, %v3909_v50  ;;  %v1648_v18 = vadd.f32 %v1399_v38, %v3913_v8  ;;  %2684 = vmatprep.subr.mxu1 %v4528_v19  ;;  %v2288_v56 = vld [vmem:[%s4484_s7 + $0x30] sm:$0xff] }
 0x1ab   :  { %v1980_v45 = vadd.f32 %v1979_v55, %v1923_v16  ;;  %v1925_v36 = vsel %vm1796_vm13, %v1731_v35, %v1861_v34  ;;  %v1730_v20 = vadd.f32 %v4119_v37, %v1644_v31  ;;  %v1732_v39 = vadd.f32 %v4121_v32, %v1646_v63  ;;  %v1405_v49 = vpop.f32.mrf.mxu0  ;;  %v1566_v60 = vpop.f32.mrf.mxu1  ;;  %2685 = vmatpush3.msra.mxu1 %v2290_v61 }
 0x1ac   :  { %v2006_v3 = vadd.f32 %v2005_v57, %v1925_v36  ;;  %v1733_v50 = vadd.f32 %v4106_v48, %v1647_v46  ;;  %v1735_v8 = vadd.f32 %v4108_v53, %v1649_v47  ;;  %v1734_v38 = vadd.f32 %v4119_v37, %v1648_v18  ;;  %2686 = vmatprep.subr.mxu1 %v4528_v19  ;;  %v2287_v46 = vld [vmem:[%s4484_s7 + $0x28] sm:$0xff] }
 0x1ad   :  { %vm1795_vm14 = vcmp.ge.f32.partialorder %v1730_v20, 0.0  ;;  %v1860_v59 = vmul.f32 %v4117_v26, %v1730_v20  ;;  %vm1797_vm15 = vcmp.ge.f32.partialorder %v1732_v39, 0.0  ;;  %v1862_v23 = vmul.f32 %v4117_v26, %v1732_v39  ;;  %v1409_v41 = vpop.f32.mrf.mxu0  ;;  %v1570_v57 = vpop.f32.mrf.mxu1  ;;  %2687 = vmatpush3.msra.mxu1 %v2289_v14 }
 0x1ae   :  { %vm1798_vm0 = vcmp.ge.f32.partialorder %v1733_v50, 0.0  ;;  %v1863_v25 = vmul.f32 %v4117_v26, %v1733_v50  ;;  %vm1800_vm1 = vcmp.ge.f32.partialorder %v1735_v8, 0.0  ;;  %v1865_v6 = vmul.f32 %v4117_v26, %v1735_v8  ;;  %2688 = vmatprep.subr.mxu1 %v4528_v19 }
 0x1af   :  { %v1924_v35 = vsel %vm1795_vm14, %v1730_v20, %v1860_v59  ;;  %v1926_v52 = vsel %vm1797_vm15, %v1732_v39, %v1862_v23  ;;  %vm1799_vm3 = vcmp.ge.f32.partialorder %v1734_v38, 0.0  ;;  %v1864_v55 = vmul.f32 %v4117_v26, %v1734_v38  ;;  %v1411_v62 = vpop.f32.mrf.mxu0  ;;  %v4217_v1 = vpop.f32.mrf.mxu1  ;;  %2689 = vmatpush3.msra.mxu1 %v2288_v56 }
 0x1b0   :  { %v1993_v34 = vadd.f32 %v1992_v42, %v1924_v35  ;;  %v2019_v31 = vadd.f32 %v2018_v2, %v1926_v52  ;;  %v1927_v63 = vsel %vm1798_vm0, %v1733_v50, %v1863_v25  ;;  %v1929_v16 = vsel %vm1800_vm1, %v1735_v8, %v1865_v6  ;;  %2690 = vmatprep.subr.mxu1 %v4528_v19 }
 0x1b1   :  { %v1981_v47 = vadd.f32 %v1980_v45, %v1927_v63  ;;  %v2007_v18 = vadd.f32 %v2006_v3, %v1929_v16  ;;  %v1928_v61 = vsel %vm1799_vm3, %v1734_v38, %v1864_v55  ;;  %v1650_v36 = vadd.f32 %v4182_v33, %v3916_v24  ;;  %v4225_v20 = vpop.f32.mrf.mxu0  ;;  %v4227_v39 = vpop.f32.mrf.mxu1  ;;  %v2286_v45 = vld [vmem:[%s4484_s7 + $0x20] sm:$0xff]  ;;  %2691 = vmatpush3.msra.mxu1 %v2287_v46 }
 0x1b2   :  { %v1994_v42 = vadd.f32 %v1993_v34, %v1928_v61  ;;  %v1651_v2 = vadd.f32 %v1403_v40, %v3919_v54  ;;  %v1653_v50 = vadd.f32 %v1564_v51, %v3922_v9  ;;  %v1652_v8 = vadd.f32 %v1405_v49, %v3928_v12  ;;  %2692 = vmatprep.subr.mxu1 %v4528_v19  ;;  %v2283_v34 = vld [vmem:[%s4484_s7 + $0x8] sm:$0xff] }
 0x1b3   :  { %v1736_v24 = vadd.f32 %v4121_v32, %v1650_v36  ;;  %v1654_v33 = vadd.f32 %v1566_v60, %v3931_v0  ;;  %v1655_v3 = vadd.f32 %v1409_v41, %v3935_v13  ;;  %v1657_v38 = vadd.f32 %v1570_v57, %v3938_v21  ;;  %v4240_v14 = vpop.f32.mrf.mxu0  ;;  %v4242_v54 = vpop.f32.mrf.mxu1  ;;  %v2285_v0 = vld [vmem:[%s4484_s7 + $0x18] sm:$0xff]  ;;  %2693 = vmatpush3.msra.mxu1 %v2286_v45  ;;  %v2284_v41 = vld [vmem:[%s4484_s7 + $0x10] sm:$0xff] }
 0x1b4   :  { %v1737_v9 = vadd.f32 %v4106_v48, %v1651_v2  ;;  %v1739_v12 = vadd.f32 %v4108_v53, %v1653_v50  ;;  %v1738_v40 = vadd.f32 %v4119_v37, %v1652_v8  ;;  %v1656_v51 = vadd.f32 %v1411_v62, %v3941_v30  ;;  %2694 = vmatprep.subr.mxu1 %v4528_v19 }
 0x1b5   :  { %vm1801_vm4 = vcmp.ge.f32.partialorder %v1736_v24, 0.0  ;;  %v1866_v13 = vmul.f32 %v4117_v26, %v1736_v24  ;;  %v1740_v21 = vadd.f32 %v4121_v32, %v1654_v33  ;;  %v1741_v49 = vadd.f32 %v4106_v48, %v1655_v3  ;;  %v4255_v60 = vpop.f32.mrf.mxu0  ;;  %v4257_v59 = vpop.f32.mrf.mxu1  ;;  %2695 = vmatpush3.msra.mxu1 %v2285_v0 }
 0x1b6   :  { %vm1802_vm5 = vcmp.ge.f32.partialorder %v1737_v9, 0.0  ;;  %v1867_v30 = vmul.f32 %v4117_v26, %v1737_v9  ;;  %vm1804_vm6 = vcmp.ge.f32.partialorder %v1739_v12, 0.0  ;;  %v1869_v23 = vmul.f32 %v4117_v26, %v1739_v12  ;;  %2696 = vmatprep.subr.mxu1 %v4528_v19 }
 0x1b7   :  { %v1930_v57 = vsel %vm1801_vm4, %v1736_v24, %v1866_v13  ;;  %vm1803_vm7 = vcmp.ge.f32.partialorder %v1738_v40, 0.0  ;;  %v1868_v25 = vmul.f32 %v4117_v26, %v1738_v40  ;;  %vm1805_vm8 = vcmp.ge.f32.partialorder %v1740_v21, 0.0  ;;  %v4266_v6 = vpop.f32.mrf.mxu0  ;;  %v4268_v56 = vpop.f32.mrf.mxu1  ;;  %2697 = vmatpush3.msra.mxu1 %v2284_v41 }
 0x1b8   :  { %v2020_v35 = vadd.f32 %v2019_v31, %v1930_v57  ;;  %v1931_v52 = vsel %vm1802_vm5, %v1737_v9, %v1867_v30  ;;  %v1933_v55 = vsel %vm1804_vm6, %v1739_v12, %v1869_v23  ;;  %v1870_v62 = vmul.f32 %v4117_v26, %v1740_v21  ;;  %2698 = vmatprep.subr.mxu1 %v4528_v19  ;;  %v4570_v57 = vld [vmem:[#allocation14_spill] sm:$0xff] }
 0x1b9   :  { %v1982_v63 = vadd.f32 %v1981_v47, %v1931_v52  ;;  %v2008_v16 = vadd.f32 %v2007_v18, %v1933_v55  ;;  %v1932_v46 = vsel %vm1803_vm7, %v1738_v40, %v1868_v25  ;;  %vm1806_vm9 = vcmp.ge.f32.partialorder %v1741_v49, 0.0  ;;  %v1427_v50 = vpop.f32.mrf.mxu0  ;;  %v4278_v8 = vpop.f32.mrf.mxu1  ;;  %2699 = vmatpush3.msra.mxu1 %v2283_v34 }
 0x1ba   :  { %v1995_v61 = vadd.f32 %v1994_v42, %v1932_v46  ;;  %v1934_v36 = vsel %vm1805_vm8, %v1740_v21, %v1870_v62  ;;  %v1871_v31 = vmul.f32 %v4117_v26, %v1741_v49  ;;  %v1743_v2 = vadd.f32 %v4108_v53, %v1657_v38  ;;  %2700 = vmatprep.subr.mxu1 %v4528_v19 }
 0x1bb   :  { %v2021_v45 = vadd.f32 %v2020_v35, %v1934_v36  ;;  %v1742_v24 = vadd.f32 %v4119_v37, %v1656_v51  ;;  %v1658_v47 = vadd.f32 %v4217_v1, %v3944_v17  ;;  %v1659_v18 = vadd.f32 %v4225_v20, %v3950_v22  ;;  %v4296_v40 = vpop.f32.mrf.mxu0  ;;  %v4298_v51 = vpop.f32.mrf.mxu1 }
 0x1bc   :  { %v1935_v42 = vsel %vm1806_vm9, %v1741_v49, %v1871_v31  ;;  %vm1808_vm10 = vcmp.ge.f32.partialorder %v1743_v2, 0.0  ;;  %v1873_v33 = vmul.f32 %v4117_v26, %v1743_v2  ;;  %v1661_v3 = vadd.f32 %v4227_v39, %v3953_v7 }
 0x1bd   :  { %v1983_v38 = vadd.f32 %v1982_v63, %v1935_v42  ;;  %vm1807_vm11 = vcmp.ge.f32.partialorder %v1742_v24, 0.0  ;;  %v1872_v9 = vmul.f32 %v4117_v26, %v1742_v24  ;;  %v1744_v12 = vadd.f32 %v4121_v32, %v1658_v47  ;;  %v1433_v35 = vpop.f32.mrf.mxu0  ;;  %v4310_v52 = vpop.f32.mrf.mxu1 }
 0x1be   :  { %v1937_v17 = vsel %vm1808_vm10, %v1743_v2, %v1873_v33  ;;  %v1745_v1 = vadd.f32 %v4106_v48, %v1659_v18  ;;  %v1747_v22 = vadd.f32 %v4108_v53, %v1661_v3  ;;  %v1660_v20 = vadd.f32 %v4240_v14, %v3957_v4 }
 0x1bf   :  { %v2009_v7 = vadd.f32 %v2008_v16, %v1937_v17  ;;  %v1936_v19 = vsel %vm1807_vm11, %v1742_v24, %v1872_v9  ;;  %vm1809_vm12 = vcmp.ge.f32.partialorder %v1744_v12, 0.0  ;;  %v1874_v39 = vmul.f32 %v4117_v26, %v1744_v12  ;;  %v4324_v24 = vpop.f32.mrf.mxu1 }
 0x1c0   :  { %v1996_v0 = vadd.f32 %v1995_v61, %v1936_v19  ;;  %vm1810_vm13 = vcmp.ge.f32.partialorder %v1745_v1, 0.0  ;;  %v1875_v13 = vmul.f32 %v4117_v26, %v1745_v1  ;;  %vm1812_vm14 = vcmp.ge.f32.partialorder %v1747_v22, 0.0 }
 0x1c1   :  { %v1938_v21 = vsel %vm1809_vm12, %v1744_v12, %v1874_v39  ;;  %v1877_v49 = vmul.f32 %v4117_v26, %v1747_v22  ;;  %v1746_v30 = vadd.f32 %v4119_v37, %v1660_v20  ;;  %v1662_v4 = vadd.f32 %v4242_v54, %v3960_v43 }
 0x1c2   :  { %v2022_v14 = vadd.f32 %v2021_v45, %v1938_v21  ;;  %v1939_v23 = vsel %vm1810_vm13, %v1745_v1, %v1875_v13  ;;  %v1663_v41 = vadd.f32 %v4255_v60, %v3963_v11  ;;  %v1665_v25 = vadd.f32 %v4257_v59, %v4570_v57  ;;  %v4571_v11 = vld [vmem:[#allocation15_spill] sm:$0xff]  ;;  %v4572_v59 = vld [vmem:[#allocation16_spill] sm:$0xff]  ;;  %v4322_v45 = vpop.f32.mrf.mxu0  ;;  %v4573_v13 = vld [vmem:[#allocation13_spill] sm:$0xff] }
 0x1c3   :  { %v1984_v55 = vadd.f32 %v1983_v38, %v1939_v23  ;;  %v1941_v62 = vsel %vm1812_vm14, %v1747_v22, %v1877_v49  ;;  %vm1811_vm15 = vcmp.ge.f32.partialorder %v1746_v30, 0.0  ;;  %v1876_v34 = vmul.f32 %v4117_v26, %v1746_v30  ;;  %v4336_v22 = vpop.f32.mrf.mxu1 }
 0x1c4   :  { %v2010_v63 = vadd.f32 %v2009_v7, %v1941_v62  ;;  %v1748_v16 = vadd.f32 %v4121_v32, %v1662_v4  ;;  %v1749_v43 = vadd.f32 %v4106_v48, %v1663_v41  ;;  %v1751_v54 = vadd.f32 %v4108_v53, %v1665_v25  ;;  %v4334_v1 = vpop.f32.mrf.mxu0 }
 0x1c5   :  { %v1940_v46 = vsel %vm1811_vm15, %v1746_v30, %v1876_v34  ;;  %v1664_v60 = vadd.f32 %v4266_v6, %v4571_v11  ;;  %v1666_v61 = vadd.f32 %v4268_v56, %v4572_v59  ;;  %v1667_v36 = vadd.f32 %v1427_v50, %v3982_v29 }
 0x1c6   :  { %v1997_v31 = vadd.f32 %v1996_v0, %v1940_v46  ;;  %vm1813_vm0 = vcmp.ge.f32.partialorder %v1748_v16, 0.0  ;;  %v1878_v2 = vmul.f32 %v4117_v26, %v1748_v16  ;;  %vm1814_vm1 = vcmp.ge.f32.partialorder %v1749_v43, 0.0  ;;  %v4348_v25 = vpop.f32.mrf.mxu0 }
 0x1c7   :  { %v1879_v47 = vmul.f32 %v4117_v26, %v1749_v43  ;;  %vm1816_vm3 = vcmp.ge.f32.partialorder %v1751_v54, 0.0  ;;  %v1881_v18 = vmul.f32 %v4117_v26, %v1751_v54  ;;  %v1750_v6 = vadd.f32 %v4119_v37, %v1664_v60 }
 0x1c8   :  { %v1942_v42 = vsel %vm1813_vm0, %v1748_v16, %v1878_v2  ;;  %v1752_v56 = vadd.f32 %v4121_v32, %v1666_v61  ;;  %v1753_v29 = vadd.f32 %v4106_v48, %v1667_v36  ;;  %v1669_v50 = vadd.f32 %v4278_v8, %v3985_v27  ;;  %v1445_v36 = vpop.f32.mrf.mxu0 }
 0x1c9   :  { %v2023_v33 = vadd.f32 %v2022_v14, %v1942_v42  ;;  %v1943_v3 = vsel %vm1814_vm1, %v1749_v43, %v1879_v47  ;;  %v1945_v38 = vsel %vm1816_vm3, %v1751_v54, %v1881_v18  ;;  %vm1815_vm4 = vcmp.ge.f32.partialorder %v1750_v6, 0.0 }
 0x1ca   :  { %v1985_v9 = vadd.f32 %v1984_v55, %v1943_v3  ;;  %v2011_v12 = vadd.f32 %v2010_v63, %v1945_v38  ;;  %v1880_v17 = vmul.f32 %v4117_v26, %v1750_v6  ;;  %vm1817_vm5 = vcmp.ge.f32.partialorder %v1752_v56, 0.0  ;;  %v4350_v55 = vpop.f32.mrf.mxu1  ;;  %v1447_v38 = vpop.f32.mrf.mxu0 }
 0x1cb   :  { %v1882_v20 = vmul.f32 %v4117_v26, %v1752_v56  ;;  %vm1818_vm6 = vcmp.ge.f32.partialorder %v1753_v29, 0.0  ;;  %v1883_v7 = vmul.f32 %v4117_v26, %v1753_v29  ;;  %v1755_v27 = vadd.f32 %v4108_v53, %v1669_v50 }
 0x1cc   :  { %v1986_v8 = vrot.slane %v1985_v9, 4  ;;  %v2012_v19 = vrot.slane %v2011_v12, 4  ;;  %v1944_v39 = vsel %vm1815_vm4, %v1750_v6, %v1880_v17  ;;  %v1668_v0 = vadd.f32 %v4296_v40, %v3991_v5 }
 0x1cd   :  { %v4345_v21 = vadd.f32 %v4100_v58, %v4573_v13  ;;  %v1998_v49 = vadd.f32 %v1997_v31, %v1944_v39  ;;  %v1946_v30 = vsel %vm1817_vm5, %v1752_v56, %v1882_v20  ;;  %v1947_v4 = vsel %vm1818_vm6, %v1753_v29, %v1883_v7  ;;  %v1606_v31 = vpop.f32.mrf.mxu1  ;;  %v4574_v7 = vld [vmem:[#allocation17_spill] sm:$0xff] }
 0x1ce   :  { %v1987_v14 = vadd.f32 %v1986_v8, %v1985_v9  ;;  %v2013_v23 = vadd.f32 %v2012_v19, %v2011_v12  ;;  %v2024_v41 = vadd.f32 %v2023_v33, %v1946_v30  ;;  %v1885_v57 = vmul.f32 %v4117_v26, %v1755_v27  ;;  %v1451_v30 = vpop.f32.mrf.mxu0 }
 0x1cf   :  { %v1999_v62 = vrot.slane %v1998_v49, 4  ;;  %v1754_v34 = vadd.f32 %v4119_v37, %v1668_v0  ;;  %v1670_v5 = vadd.f32 %v4298_v51, %v3993_v44  ;;  %v1671_v58 = vadd.f32 %v1433_v35, %v3997_v28  ;;  %v1608_v9 = vpop.f32.mrf.mxu1 }
 0x1d0   :  { %v1988_v40 = vrot.slane %v1987_v14, 2  ;;  %v2014_v63 = vrot.slane %v2013_v23, 2  ;;  %v2025_v16 = vrot.slane %v2024_v41, 4  ;;  %vm1820_vm7 = vcmp.ge.f32.partialorder %v1755_v27, 0.0 }
 0x1d1   :  { %v2000_v43 = vadd.f32 %v1999_v62, %v1998_v49  ;;  %vm1819_vm8 = vcmp.ge.f32.partialorder %v1754_v34, 0.0  ;;  %v1884_v54 = vmul.f32 %v4117_v26, %v1754_v34  ;;  %v1756_v46 = vadd.f32 %v4121_v32, %v1670_v5 }
 0x1d2   :  { %v1989_v11 = vadd.f32 %v1988_v40, %v1987_v14  ;;  %v2015_v60 = vadd.f32 %v2014_v63, %v2013_v23  ;;  %v2026_v59 = vadd.f32 %v2025_v16, %v2024_v41  ;;  %v1757_v61 = vadd.f32 %v4106_v48, %v1671_v58  ;;  %v4576_v58 = vld [vmem:[#allocation7_spill] sm:$0xff]  ;;  %v4577_v63 = vld [vmem:[#allocation8_spill] sm:$0xff] }
 0x1d3   :  { %v2001_v44 = vrot.slane %v2000_v43, 2  ;;  %v1949_v51 = vsel %vm1820_vm7, %v1755_v27, %v1885_v57  ;;  %vm1821_vm9 = vcmp.ge.f32.partialorder %v1756_v46, 0.0  ;;  %v1886_v28 = vmul.f32 %v4117_v26, %v1756_v46 }
 0x1d4   :  { %v1990_v35 = vrot.slane %v1989_v11, 1  ;;  %v2016_v2 = vrot.slane %v2015_v60, 1  ;;  %v2027_v47 = vrot.slane %v2026_v59, 2  ;;  %vm1822_vm10 = vcmp.ge.f32.partialorder %v1757_v61, 0.0 }
 0x1d5   :  { %v2002_v18 = vadd.f32 %v2001_v44, %v2000_v43  ;;  %v1948_v6 = vsel %vm1819_vm8, %v1754_v34, %v1884_v54  ;;  %v1887_v42 = vmul.f32 %v4117_v26, %v1757_v61  ;;  %v1673_v56 = vadd.f32 %v4310_v52, %v4000_v10  ;;  %v4575_v52 = vld [vmem:[#allocation18_spill] sm:$0xff] }
 0x1d6   :  { %v1991_v29 = vadd.f32 %v1990_v35, %v1989_v11  ;;  %v4364_v50 = vadd.f32 %v2027_v47, %v2026_v59  ;;  %v1950_v33 = vsel %vm1821_vm9, %v1756_v46, %v1886_v28  ;;  %v1672_v3 = vadd.f32 %v4322_v45, %v4003_v15  ;;  %v4578_v46 = vld [vmem:[#allocation19_spill] sm:$0xff] }
 0x1d7   :  { %v2003_v12 = vrot.slane %v2002_v18, 1  ;;  %v1951_v17 = vsel %vm1822_vm10, %v1757_v61, %v1887_v42  ;;  %v1759_v20 = vadd.f32 %v4108_v53, %v1673_v56  ;;  %v1674_v27 = vadd.f32 %v4324_v24, %v4574_v7  ;;  %v1453_v61 = vpop.f32.mrf.mxu0  ;;  %v4582_v42 = vld [vmem:[#allocation29_spill] sm:$0xff] }
 0x1d8   :  { %v4371_v8 = vadd.f32 %v2016_v2, %v2015_v60  ;;  %v2031_v19 = vadd.f32 %v1951_v17, %v1947_v4  ;;  %v1758_v10 = vadd.f32 %v4119_v37, %v1672_v3  ;;  %v1675_v39 = vadd.f32 %v4334_v1, %v4575_v52  ;;  %v1612_v4 = vpop.f32.mrf.mxu1  ;;  %v4579_v60 = vld [vmem:[#allocation20_spill] sm:$0xff]  ;;  %v4580_v2 = vld [vmem:[#allocation27_spill] sm:$0xff] }
 0x1d9   :  { %v2004_v0 = vadd.f32 %v2003_v12, %v2002_v18  ;;  %vm1824_vm11 = vcmp.ge.f32.partialorder %v1759_v20, 0.0  ;;  %v1889_v15 = vmul.f32 %v4117_v26, %v1759_v20  ;;  %v1760_v45 = vadd.f32 %v4121_v32, %v1674_v27  ;;  %v4581_v18 = vld [vmem:[#allocation28_spill] sm:$0xff] }
 0x1da   :  { %v2029_v13 = vrot.slane %v4364_v50, 1  ;;  %vm1823_vm12 = vcmp.ge.f32.partialorder %v1758_v10, 0.0  ;;  %v1888_v49 = vmul.f32 %v4117_v26, %v1758_v10  ;;  %v1761_v24 = vadd.f32 %v4106_v48, %v1675_v39  ;;  %v1614_v44 = vpop.f32.mrf.mxu1 }
 0x1db   :  { %v4381_v14 = vadd.f32 %v2004_v0, %v1991_v29  ;;  %v1953_v23 = vsel %vm1824_vm11, %v1759_v20, %v1889_v15  ;;  %vm1825_vm13 = vcmp.ge.f32.partialorder %v1760_v45, 0.0  ;;  %v1890_v1 = vmul.f32 %v4117_v26, %v1760_v45 }
 0x1dc   :  { %v2057_v41 = vadd.f32 %v1953_v23, %v1949_v51  ;;  %v1952_v57 = vsel %vm1823_vm12, %v1758_v10, %v1888_v49  ;;  %vm1826_vm14 = vcmp.ge.f32.partialorder %v1761_v24, 0.0  ;;  %v1891_v62 = vmul.f32 %v4117_v26, %v1761_v24  ;;  %v1618_v3 = vpop.f32.mrf.mxu1 }
 0x1dd   :  { %v2044_v34 = vadd.f32 %v1952_v57, %v1948_v6  ;;  %v1954_v5 = vsel %vm1825_vm13, %v1760_v45, %v1890_v1  ;;  %v1677_v40 = vadd.f32 %v4336_v22, %v4576_v58  ;;  %v1676_v16 = vadd.f32 %v4348_v25, %v4577_v63  ;;  %v4583_v45 = vld [vmem:[#allocation21_spill] sm:$0xff]  ;;  %v4584_v57 = vld [vmem:[#allocation22_spill] sm:$0xff] }
 0x1de   :  { %v2070_v43 = vadd.f32 %v1954_v5, %v1950_v33  ;;  %v1955_v54 = vsel %vm1826_vm14, %v1761_v24, %v1891_v62  ;;  %v1678_v11 = vadd.f32 %v4350_v55, %v4578_v46  ;;  %v1679_v59 = vadd.f32 %v1445_v36, %v4579_v60  ;;  %v1457_v33 = vpop.f32.mrf.mxu0  ;;  %v1620_v23 = vpop.f32.mrf.mxu1  ;;  %v4585_v62 = vld [vmem:[#allocation23_spill] sm:$0xff]  ;;  %v4586_v5 = vld [vmem:[#allocation24_spill] sm:$0xff] }
 0x1df   :  { %v2032_v51 = vadd.f32 %v2031_v19, %v1955_v54  ;;  %v1763_v28 = vadd.f32 %v4108_v53, %v1677_v40  ;;  %v1762_v35 = vadd.f32 %v4119_v37, %v1676_v16  ;;  %v1681_v47 = vadd.f32 %v1606_v31, %v4580_v2 }
 0x1e0   :  { %v1764_v22 = vadd.f32 %v4121_v32, %v1678_v11  ;;  %v1765_v25 = vadd.f32 %v4106_v48, %v1679_v59  ;;  %v1680_v6 = vadd.f32 %v1447_v38, %v4581_v18  ;;  %v1682_v56 = vadd.f32 %v1608_v9, %v4582_v42  ;;  %v1459_v24 = vpop.f32.mrf.mxu0 }
 0x1e1   :  { %vm1828_vm15 = vcmp.ge.f32.partialorder %v1763_v28, 0.0  ;;  %v1893_v55 = vmul.f32 %v4117_v26, %v1763_v28  ;;  %vm1827_vm0 = vcmp.ge.f32.partialorder %v1762_v35, 0.0  ;;  %v1892_v36 = vmul.f32 %v4117_v26, %v1762_v35 }
 0x1e2   :  { %vm1829_vm1 = vcmp.ge.f32.partialorder %v1764_v22, 0.0  ;;  %v1894_v29 = vmul.f32 %v4117_v26, %v1764_v22  ;;  %vm1830_vm3 = vcmp.ge.f32.partialorder %v1765_v25, 0.0  ;;  %v1895_v31 = vmul.f32 %v4117_v26, %v1765_v25 }
 0x1e3   :  { %v1957_v12 = vsel %vm1828_vm15, %v1763_v28, %v1893_v55  ;;  %v1956_v17 = vsel %vm1827_vm0, %v1762_v35, %v1892_v36  ;;  %v1767_v38 = vadd.f32 %v4108_v53, %v1681_v47  ;;  %v1766_v9 = vadd.f32 %v4119_v37, %v1680_v6  ;;  %v1624_v28 = vpop.f32.mrf.mxu1 }
 0x1e4   :  { %v2058_v20 = vadd.f32 %v2057_v41, %v1957_v12  ;;  %v2045_v7 = vadd.f32 %v2044_v34, %v1956_v17  ;;  %v1958_v27 = vsel %vm1829_vm1, %v1764_v22, %v1894_v29  ;;  %v1959_v19 = vsel %vm1830_vm3, %v1765_v25, %v1895_v31  ;;  %v4589_v29 = vld [vmem:[#allocation9_spill] sm:$0xff] }
 0x1e5   :  { %v2071_v10 = vadd.f32 %v2070_v43, %v1958_v27  ;;  %v2033_v52 = vadd.f32 %v2032_v51, %v1959_v19  ;;  %vm1832_vm4 = vcmp.ge.f32.partialorder %v1767_v38, 0.0  ;;  %v1897_v39 = vmul.f32 %v4117_v26, %v1767_v38  ;;  %v4590_v19 = vld [vmem:[#allocation10_spill] sm:$0xff] }
 0x1e6   :  { %vm1831_vm5 = vcmp.ge.f32.partialorder %v1766_v9, 0.0  ;;  %v1896_v0 = vmul.f32 %v4117_v26, %v1766_v9  ;;  %v1768_v15 = vadd.f32 %v4121_v32, %v1682_v56  ;;  %v1683_v49 = vadd.f32 %v1451_v30, %v4583_v45 }
 0x1e7   :  { %v1961_v1 = vsel %vm1832_vm4, %v1767_v38, %v1897_v39  ;;  %v1685_v41 = vadd.f32 %v1612_v4, %v4584_v57  ;;  %v1684_v34 = vadd.f32 %v1453_v61, %v4585_v62  ;;  %v1686_v58 = vadd.f32 %v1614_v44, %v4586_v5  ;;  %v4587_v4 = vld [vmem:[#allocation25_spill] sm:$0xff]  ;;  %v4588_v61 = vld [vmem:[#allocation26_spill] sm:$0xff]  ;;  %v1463_v44 = vpop.f32.mrf.mxu0  ;;  %v4594_v57 = vld [vmem:[#allocation31_spill] sm:$0xff] }
 0x1e8   :  { %v2059_v40 = vadd.f32 %v2058_v20, %v1961_v1  ;;  %v1960_v63 = vsel %vm1831_vm5, %v1766_v9, %v1896_v0  ;;  %vm1833_vm6 = vcmp.ge.f32.partialorder %v1768_v15, 0.0  ;;  %v1898_v16 = vmul.f32 %v4117_v26, %v1768_v15  ;;  %v4592_v0 = vld [vmem:[#allocation12_spill] sm:$0xff] }
 0x1e9   :  { %v2046_v43 = vadd.f32 %v2045_v7, %v1960_v63  ;;  %v1769_v54 = vadd.f32 %v4106_v48, %v1683_v49  ;;  %v1771_v46 = vadd.f32 %v4108_v53, %v1685_v41  ;;  %v1770_v30 = vadd.f32 %v4119_v37, %v1684_v34 }
 0x1ea   :  { %v1962_v11 = vsel %vm1833_vm6, %v1768_v15, %v1898_v16  ;;  %v1772_v60 = vadd.f32 %v4121_v32, %v1686_v58  ;;  %v1687_v59 = vadd.f32 %v1457_v33, %v4587_v4  ;;  %v1689_v51 = vadd.f32 %v1618_v3, %v4588_v61  ;;  %v1465_v33 = vpop.f32.mrf.mxu0  ;;  %v1626_v3 = vpop.f32.mrf.mxu1 }
 0x1eb   :  { %v2072_v35 = vadd.f32 %v2071_v10, %v1962_v11  ;;  %vm1834_vm7 = vcmp.ge.f32.partialorder %v1769_v54, 0.0  ;;  %v1899_v2 = vmul.f32 %v4117_v26, %v1769_v54  ;;  %vm1836_vm8 = vcmp.ge.f32.partialorder %v1771_v46, 0.0 }
 0x1ec   :  { %v1901_v47 = vmul.f32 %v4117_v26, %v1771_v46  ;;  %vm1835_vm9 = vcmp.ge.f32.partialorder %v1770_v30, 0.0  ;;  %v1900_v22 = vmul.f32 %v4117_v26, %v1770_v30  ;;  %vm1837_vm10 = vcmp.ge.f32.partialorder %v1772_v60, 0.0  ;;  %v1469_v62 = vpop.f32.mrf.mxu0  ;;  %v1630_v34 = vpop.f32.mrf.mxu1 }
 0x1ed   :  { %v1963_v25 = vsel %vm1834_vm7, %v1769_v54, %v1899_v2  ;;  %v1902_v18 = vmul.f32 %v4117_v26, %v1772_v60  ;;  %v1773_v6 = vadd.f32 %v4106_v48, %v1687_v59  ;;  %v1775_v42 = vadd.f32 %v4108_v53, %v1689_v51 }
 0x1ee   :  { %v2034_v56 = vadd.f32 %v2033_v52, %v1963_v25  ;;  %v1965_v55 = vsel %vm1836_vm8, %v1771_v46, %v1901_v47  ;;  %v1964_v36 = vsel %vm1835_vm9, %v1770_v30, %v1900_v22  ;;  %v1688_v31 = vadd.f32 %v1459_v24, %v4589_v29  ;;  %v4591_v52 = vld [vmem:[#allocation11_spill] sm:$0xff]  ;;  %v4593_v24 = vld [vmem:[#allocation30_spill] sm:$0xff]  ;;  %v4595_v30 = vld [vmem:[#allocation32_spill] sm:$0xff] }
 0x1ef   :  { %v2060_v12 = vadd.f32 %v2059_v40, %v1965_v55  ;;  %v2047_v17 = vadd.f32 %v2046_v43, %v1964_v36  ;;  %v1966_v38 = vsel %vm1837_vm10, %v1772_v60, %v1902_v18  ;;  %vm1838_vm11 = vcmp.ge.f32.partialorder %v1773_v6, 0.0  ;;  %v4596_v60 = vld [vmem:[#allocation33_spill] sm:$0xff] }
 0x1f0   :  { %v2073_v9 = vadd.f32 %v2072_v35, %v1966_v38  ;;  %v1903_v20 = vmul.f32 %v4117_v26, %v1773_v6  ;;  %vm1840_vm12 = vcmp.ge.f32.partialorder %v1775_v42, 0.0  ;;  %v1905_v7 = vmul.f32 %v4117_v26, %v1775_v42 }
 0x1f1   :  { %v1774_v27 = vadd.f32 %v4119_v37, %v1688_v31  ;;  %v1690_v10 = vadd.f32 %v1620_v23, %v4590_v19  ;;  %v1691_v39 = vadd.f32 %v1463_v44, %v4591_v52  ;;  %v1693_v15 = vadd.f32 %v1624_v28, %v4592_v0 }
 0x1f2   :  { %v1967_v45 = vsel %vm1838_vm11, %v1773_v6, %v1903_v20  ;;  %v1969_v49 = vsel %vm1840_vm12, %v1775_v42, %v1905_v7  ;;  %v1692_v1 = vadd.f32 %v1465_v33, %v4593_v24  ;;  %v1694_v41 = vadd.f32 %v1626_v3, %v4594_v57  ;;  %v1471_v6 = vpop.f32.mrf.mxu0  ;;  %v1632_v42 = vpop.f32.mrf.mxu1 }
 0x1f3   :  { %v2035_v5 = vadd.f32 %v2034_v56, %v1967_v45  ;;  %v2061_v58 = vadd.f32 %v2060_v12, %v1969_v49  ;;  %vm1839_vm13 = vcmp.ge.f32.partialorder %v1774_v27, 0.0  ;;  %v1904_v40 = vmul.f32 %v4117_v26, %v1774_v27 }
 0x1f4   :  { %v1776_v63 = vadd.f32 %v4121_v32, %v1690_v10  ;;  %v1777_v23 = vadd.f32 %v4106_v48, %v1691_v39  ;;  %v1779_v16 = vadd.f32 %v4108_v53, %v1693_v15  ;;  %v1778_v43 = vadd.f32 %v4119_v37, %v1692_v1 }
 0x1f5   :  { %v1968_v54 = vsel %vm1839_vm13, %v1774_v27, %v1904_v40  ;;  %v1780_v46 = vadd.f32 %v4121_v32, %v1694_v41  ;;  %v1695_v11 = vadd.f32 %v1469_v62, %v4595_v30  ;;  %v1697_v4 = vadd.f32 %v1630_v34, %v4596_v60 }
 0x1f6   :  { %v2048_v59 = vadd.f32 %v2047_v17, %v1968_v54  ;;  %vm1841_vm14 = vcmp.ge.f32.partialorder %v1776_v63, 0.0  ;;  %v1906_v61 = vmul.f32 %v4117_v26, %v1776_v63  ;;  %vm1842_vm15 = vcmp.ge.f32.partialorder %v1777_v23, 0.0  ;;  %v4597_v17 = vld [vmem:[#allocation34_spill] sm:$0xff] }
 0x1f7   :  { %v1907_v51 = vmul.f32 %v4117_v26, %v1777_v23  ;;  %vm1844_vm0 = vcmp.ge.f32.partialorder %v1779_v16, 0.0  ;;  %v1909_v44 = vmul.f32 %v4117_v26, %v1779_v16  ;;  %vm1843_vm1 = vcmp.ge.f32.partialorder %v1778_v43, 0.0 }
 0x1f8   :  { %v1970_v28 = vsel %vm1841_vm14, %v1776_v63, %v1906_v61  ;;  %v1908_v35 = vmul.f32 %v4117_v26, %v1778_v43  ;;  %vm1845_vm3 = vcmp.ge.f32.partialorder %v1780_v46, 0.0  ;;  %v1910_v2 = vmul.f32 %v4117_v26, %v1780_v46 }
 0x1f9   :  { %v2074_v47 = vadd.f32 %v2073_v9, %v1970_v28  ;;  %v1971_v22 = vsel %vm1842_vm15, %v1777_v23, %v1907_v51  ;;  %v1973_v25 = vsel %vm1844_vm0, %v1779_v16, %v1909_v44  ;;  %v1781_v18 = vadd.f32 %v4106_v48, %v1695_v11  ;;  %v4598_v51 = vld [vmem:[#allocation6_spill] sm:$0xff] }
 0x1fa   :  { %v2036_v56 = vadd.f32 %v2035_v5, %v1971_v22  ;;  %v2062_v55 = vadd.f32 %v2061_v58, %v1973_v25  ;;  %v1972_v36 = vsel %vm1843_vm1, %v1778_v43, %v1908_v35  ;;  %v1974_v29 = vsel %vm1845_vm3, %v1780_v46, %v1910_v2  ;;  %v4599_v2 = vld [vmem:[#allocation5_spill] sm:$0xff] }
 0x1fb   :  { %v2049_v31 = vadd.f32 %v2048_v59, %v1972_v36  ;;  %v2075_v33 = vadd.f32 %v2074_v47, %v1974_v29  ;;  %vm1846_vm4 = vcmp.ge.f32.partialorder %v1781_v18, 0.0  ;;  %v1911_v3 = vmul.f32 %v4117_v26, %v1781_v18 }
 0x1fc   :  { %v1783_v12 = vadd.f32 %v4108_v53, %v1697_v4  ;;  %v1696_v38 = vadd.f32 %v1471_v6, %v4597_v17  ;;  %v1698_v9 = vadd.f32 %v1632_v42, %v4345_v21  ;;  %v2085_v48 = vadd.f32 %v4381_v14, %v4371_v8 }
 0x1fd   :  { %v2030_v20 = vadd.f32 %v2029_v13, %v4364_v50  ;;  %v1975_v7 = vsel %vm1846_vm4, %v1781_v18, %v1911_v3 }
 0x1fe   :  { %v2037_v27 = vadd.f32 %v2036_v56, %v1975_v7  ;;  %vm1848_vm5 = vcmp.ge.f32.partialorder %v1783_v12, 0.0  ;;  %v1913_v19 = vmul.f32 %v4117_v26, %v1783_v12  ;;  %v1782_v10 = vadd.f32 %v4119_v37, %v1696_v38 }
 0x1ff   :  { %v1784_v53 = vadd.f32 %v4121_v32, %v1698_v9  ;;  %v2087_v52 = vadd.f32 %v2085_v48, %v2030_v20  ;;  %v2561_v20 = vld [vmem:[%s4485_s8] ss:$0 sm:$0xff] }
 0x200   :  { %v2038_v39 = vrot.slane %v2037_v27, 4  ;;  %v1977_v0 = vsel %vm1848_vm5, %v1783_v12, %v1913_v19  ;;  %vm1847_vm6 = vcmp.ge.f32.partialorder %v1782_v10, 0.0  ;;  %v1912_v21 = vmul.f32 %v4117_v26, %v1782_v10 }
 0x201   :  { %v2063_v8 = vadd.f32 %v2062_v55, %v1977_v0  ;;  %vm1849_vm7 = vcmp.ge.f32.partialorder %v1784_v53, 0.0  ;;  %v1914_v14 = vmul.f32 %v4117_v26, %v1784_v53  ;;  %v2168_v26 = vpop.permute.xlu0 %2167  ;;  %v2089_v18 = vmul.f32 0.00390625, %v2087_v52 }
 0x202   :  { %v2039_v50 = vadd.f32 %v2038_v39, %v2037_v27  ;;  %v1976_v13 = vsel %vm1847_vm6, %v1782_v10, %v1912_v21  ;;  %v2170_v30 = vrot.slane %v2168_v26, 1  ;;  %v2173_v47 = vadd.f32 %v2168_v26, %v4599_v2 }
 0x203   :  { %v2064_v15 = vrot.slane %v2063_v8, 4  ;;  %v2050_v45 = vadd.f32 %v2049_v31, %v1976_v13  ;;  %v1978_v49 = vsel %vm1849_vm7, %v1784_v53, %v1914_v14  ;;  %v2282_v31 = vld [vmem:[%s4484_s7] sm:$0xff]  ;;  %v2279_v12 = vstv %s2559_s19 }
 0x204   :  { %v2040_v24 = vrot.slane %v2039_v50, 2  ;;  %v2076_v1 = vadd.f32 %v2075_v33, %v1978_v49  ;;  %v2174_v44 = vadd.f32 %v2170_v30, %v4598_v51  ;;  %v2175_v42 = vmul.f32 0.00390625, %v2173_v47  ;;  %2701 = vmatpush3.msra.mxu1 %v2282_v31  ;;  %v2560_v33 = vld [vmem:[%s4483_s6] ss:$0 sm:$0xff] }
 0x205   :  { %v2065_v37 = vadd.f32 %v2064_v15, %v2063_v8  ;;  %v2051_v57 = vrot.slane %v2050_v45, 4 }
 0x206   :  { %v2077_v32 = vrot.slane %v2076_v1, 4  ;;  %v2041_v41 = vadd.f32 %v2040_v24, %v2039_v50  ;;  %v2176_v25 = vmul.f32 0.00390625, %v2174_v44  ;;  %v2177_v55 = vadd.f32 %v2175_v42, %v2089_v18 }
 0x207   :  { %v2066_v62 = vrot.slane %v2065_v37, 2  ;;  %v2052_v34 = vadd.f32 %v2051_v57, %v2050_v45 }
 0x208   :  { %v2078_v5 = vadd.f32 %v2077_v32, %v2076_v1  ;;  %v2042_v23 = vrot.slane %v2041_v41, 1 }
 0x209   :  { %v2067_v58 = vadd.f32 %v2066_v62, %v2065_v37  ;;  %v2053_v40 = vrot.slane %v2052_v34, 2 }
 0x20a   :  { %v2079_v63 = vrot.slane %v2078_v5, 2  ;;  %v2043_v11 = vadd.f32 %v2042_v23, %v2041_v41 }
 0x20b   :  { %v2054_v16 = vadd.f32 %v2053_v40, %v2052_v34  ;;  %v2068_v54 = vrot.slane %v2067_v58, 1 }
 0x20c   :  { %v2080_v43 = vadd.f32 %v2079_v63, %v2078_v5 }
 0x20d   :  { %v2055_v46 = vrot.slane %v2054_v16, 1  ;;  %v2069_v59 = vadd.f32 %v2068_v54, %v2067_v58 }
 0x20e   :  { %v2081_v4 = vrot.slane %v2080_v43, 1 }
 0x20f   :  { %v2056_v60 = vadd.f32 %v2055_v46, %v2054_v16 }
 0x210   :  { %v2082_v28 = vadd.f32 %v2081_v4, %v2080_v43 }
 0x211   :  { %v2084_v61 = vadd.f32 %v2056_v60, %v2043_v11 }
 0x213   :  { %v2086_v35 = vadd.f32 %v2084_v61, %v2069_v59 }
 0x215   :  { %v2088_v22 = vadd.f32 %v2086_v35, %v2082_v28 }
 0x217   :  { %v2090_v6 = vmul.f32 0.00390625, %v2088_v22 }
 0x219   :  { %v2178_v56 = vadd.f32 %v2176_v25, %v2090_v6 }
 0x21b   :  { %v2205_v36 = vrot.slane %v2178_v56, 7 }
 0x21d   :  { %v2206_v29 = vsel %vm2151_vm2, %v2205_v36, %v2177_v55 }
 0x21e   :  { %2668 = vmatmul.mubr.f32.vlgmr.msra.gmra.mxu0 %v2206_v29 }
 0x2de   :  { %v2274_v3 = vpop.f32.mrf.mxu0 }
 0x2df   :  { %v2275_v17 = vadd.f32 %v2560_v33, %v2274_v3 }
 0x2e0   :  { %v2669_v38 = vpop.f32.mrf.mxu0 }
 0x2e1   :  { %vm2278_vm8 = vcmp.ge.f32.partialorder %v2275_v17, 0.0  ;;  %v2280_v9 = vmul.f32 %v2279_v12, %v2275_v17 }
 0x2e3   :  { %v2281_v48 = vsel %vm2278_vm8, %v2275_v17, %v2280_v9 }
 0x2e4   :  { %2703 = vmatmul.mubr.f32.vlgmr.msra.gmra.mxu1 %v2281_v48 }
 0x3a4   :  { %v2371_v7 = vpop.f32.mrf.mxu1 }
 0x3a5   :  { %v2372_v27 = vadd.f32 %v2561_v20, %v2371_v7 }
 0x3a6   :  { %v2704_v19 = vpop.f32.mrf.mxu1 }
 0x3a7   :  { %v2375_v10 = vsub.f32 0.0, %v2372_v27 }
 0x3a9   :  { %v2376_v53 = vmul.f32 1.442695, %v2375_v10 }
 0x3ab   :  { %2710 = vpow2.f32 %v2376_v53 }
 0x3b8   :  { %v2711_v52 = vpop.eup %2710 }
 0x3b9   :  { %v2378_v39 = vadd.f32 1.0, %v2711_v52 }
 0x3bb   :  { %2712 = vrcp.f32 %v2378_v39 }
 0x3c8   :  { %v2713_v0 = vpop.eup %2712 }
 0x3c9   :  { %2381 = vst [vmem:[%s4486_s9] sm:$0x3] %v2713_v0 }
 0x3ca   :  { %2386 = vsyncpa [#allocation3], 1 }

</bundles_post_ra>
